<compile_context>
chip_gen: v7x
topology: tpu7x:2x2x1
jax: 0.10.0
libtpu: 0.0.40
codegen_flags: <defaults>
</compile_context>

<pallas_src>
import functools

import jax
import jax.numpy as jnp
from jax import lax
from jax.experimental import pallas as pl
from jax.experimental.pallas import tpu as pltpu


# ----------------------------- activations ---------------------------------
def _relu(x):
    return jnp.maximum(x, 0.0)


def _neg_softplus(x):
    # numerically stable -softplus(x) = -(max(x,0) + log1p(exp(-|x|)))
    return -(jnp.maximum(x, 0.0) + jnp.log1p(jnp.exp(-jnp.abs(x))))


# ----------------------------- fused Pallas kernel ---------------------------
def _fused_kernel(xg_ref, mask_ref, cpick_ref, cbcast_ref,
                  w1_ref, b1_ref, w2_ref, b2_ref, w3_ref, b3_ref,
                  o_ref, stack1_ref, stack2_ref, h1g_ref,
                  *, Wp, G, GP, L_out, gamma, ext_coeff):
    """Whole UNetDisStatic forward for TB images (one batch tile).

    Lane layout: image b occupies lanes [b*SEG, (b+1)*SEG) of the output axis,
    its flattened zero-padded plane (Mp lanes) sits at offset G inside the input
    segment; channels live on sublanes.

      xg_ref  : (1, Cp, L_in)      zero-guarded concatenated input (L_in = L_out+2G)
      mask    : (1, L_out)         1.0 at true interior image positions
      cpick   : (L_out, TBp)       one-hot picks each image's (d,d) val lane
      cbcast  : (TBp, L_out)       broadcasts each image's center over its segment
      w1      : (C1, 9*Cp)         merged (util|ext|val) layer-1 taps
      w2      : (C1, 9*C1)         merged block-diagonal layer-2 taps
      w3      : (3, C1)            merged 1x1 heads (util, ext, val)
      o_ref   : (1, 1, L_out)      f_val (junk at non-interior lanes, cropped later)
      stack*  : VMEM tap stacks    (9*Cp, L_out) / (9*C1, L_out)
      h1g_ref : (C1, L_out + 2*GP) zero-guarded layer-1 activations
    """
    Cp = xg_ref.shape[1]
    C1 = w2_ref.shape[0]
    shifts = [ky * Wp + kx for ky in range(3) for kx in range(3)]

    # ---- layer 1: gather the 9 shifted tap windows, ONE merged matmul ---------
    for t, s in enumerate(shifts):
        stack1_ref[t * Cp:(t + 1) * Cp, :] = xg_ref[0, :, s:s + L_out]
    h1 = _relu(jnp.dot(w1_ref[...], stack1_ref[...],
                       preferred_element_type=jnp.float32) + b1_ref[...])

    # ---- guarded layer-1 activations: zero halos so layer 2 sees zero padding --
    # only the two guard bands are zeroed (cheap); the masked interior write is at
    # a 128-aligned lane offset -> unmasked stores.
    h1g_ref[:, 0:GP] = jnp.zeros((C1, GP), jnp.float32)
    h1g_ref[:, GP + L_out:GP + L_out + GP] = jnp.zeros((C1, GP), jnp.float32)
    h1g_ref[:, GP:GP + L_out] = h1 * mask_ref[...]

    # ---- layer 2: same structure, merged block-diagonal weights ---------------
    for t, s in enumerate(shifts):
        w = s + GP - G
        stack2_ref[t * C1:(t + 1) * C1, :] = h1g_ref[:, w:w + L_out]
    h2 = _relu(jnp.dot(w2_ref[...], stack2_ref[...],
                       preferred_element_type=jnp.float32) + b2_ref[...])

    # ---- layer 3: 1x1 conv to the 3 heads, -softplus ---------------------------
    z = jnp.dot(w3_ref[...], h2, preferred_element_type=jnp.float32) + b3_ref[...]
    h3 = _neg_softplus(z)                                   # (3, L_out): util|ext|val

    # ---- f_val = util + ext_coeff*ext + gamma*val - val[center of each image] --
    util = h3[0:1, :]
    ext = h3[1:2, :]
    val = h3[2:3, :]
    centers = jnp.dot(val, cpick_ref[...], preferred_element_type=jnp.float32)      # (1, TBp)
    center_bc = jnp.dot(centers, cbcast_ref[...], preferred_element_type=jnp.float32)  # (1, L_out)
    o_ref[0] = util + ext_coeff * ext + gamma * val - center_bc


# ----------------------------- parameter init --------------------------------
def init_unet_params(key, in_ch, hidden, out_ch):
    ks = jax.random.split(key, 6)
    s = 0.2
    return {
        "w1": s * jax.random.normal(ks[0], (3, 3, in_ch, hidden), jnp.float32),
        "b1": s * jax.random.normal(ks[1], (hidden,), jnp.float32),
        "w2": s * jax.random.normal(ks[2], (3, 3, hidden, hidden), jnp.float32),
        "b2": s * jax.random.normal(ks[3], (hidden,), jnp.float32),
        "w3": s * jax.random.normal(ks[4], (1, 1, hidden, out_ch), jnp.float32),
        "b3": s * jax.random.normal(ks[5], (out_ch,), jnp.float32),
    }


def init_unet_dis_static(key, feature_num, context_num, output_channel, hidden):
    total = feature_num + context_num
    k1, k2, k3 = jax.random.split(key, 3)
    return {
        "util": init_unet_params(k1, total, hidden, 1),
        "ext": init_unet_params(k2, total + output_channel - 1, hidden, 1),
        "val": init_unet_params(k3, total, hidden, 1),
    }


# ----------------------------- weight merging --------------------------------
def build_fused_weights(params, total, c_ext, cp):
    """Merge util/ext/val into one weight set and flatten the 9 taps into K."""
    pu, pe, pv = params["util"], params["ext"], params["val"]
    h = pu["w1"].shape[-1]
    C1 = 3 * h

    w1 = jnp.zeros((9, cp, C1), jnp.float32)       # pad channels get zero weights
    w2 = jnp.zeros((9, C1, C1), jnp.float32)
    for t in range(9):
        ky, kx = divmod(t, 3)
        w1 = w1.at[t, :total, 0:h].set(pu["w1"][ky, kx])
        w1 = w1.at[t, :c_ext, h:2 * h].set(pe["w1"][ky, kx])
        w1 = w1.at[t, :total, 2 * h:3 * h].set(pv["w1"][ky, kx])
        w2 = w2.at[t, 0:h, 0:h].set(pu["w2"][ky, kx])
        w2 = w2.at[t, h:2 * h, h:2 * h].set(pe["w2"][ky, kx])
        w2 = w2.at[t, 2 * h:3 * h, 2 * h:3 * h].set(pv["w2"][ky, kx])

    # (9, Cin, C1) -> (C1, 9*Cin), matching the tap-stack row order (tap, cin)
    w1m = jnp.transpose(w1, (2, 0, 1)).reshape(C1, 9 * cp)
    w2m = jnp.transpose(w2, (2, 0, 1)).reshape(C1, 9 * C1)

    w3 = jnp.zeros((C1, 3), jnp.float32)
    w3 = w3.at[0:h, 0].set(pu["w3"][0, 0, :, 0])
    w3 = w3.at[h:2 * h, 1].set(pe["w3"][0, 0, :, 0])
    w3 = w3.at[2 * h:3 * h, 2].set(pv["w3"][0, 0, :, 0])

    return {
        "w1": w1m,
        "w2": w2m,
        "w3": w3.T,                                                    # (3, C1)
        "b1": jnp.concatenate([pu["b1"], pe["b1"], pv["b1"]]).reshape(C1, 1),
        "b2": jnp.concatenate([pu["b2"], pe["b2"], pv["b2"]]).reshape(C1, 1),
        "b3": jnp.stack([pu["b3"][0], pe["b3"][0], pv["b3"][0]]).reshape(3, 1),
    }


# ----------------------------- forward wrapper --------------------------------
def unet_dis_static_forward(params, x_nchw, pi_other_nchw, *, gamma=0.9,
                            ext_coeff=1.0, batch_tile=None):
    if x_nchw.shape[-1] % 2 != 1:
        raise Exception("input.shape[-1] should be odd.")
    d = (x_nchw.shape[-1] - 1) // 2

    # torch.cat(dim=1) == channel concat in NCHW (kept NCHW end-to-end).
    ext_in = jnp.concatenate([x_nchw, pi_other_nchw], axis=1)        # (N, C_ext, H, W)
    N, C_ext, H, W = ext_in.shape
    total = x_nchw.shape[1]

    Hp, Wp = H + 2, W + 2
    Mp = Hp * Wp                       # flattened padded-plane size
    G = Wp + 1                         # max |flat tap offset| of a 3x3 conv
    GP = 128                           # 128-aligned guard for the layer-1 buffer
    SEG = Mp + 2 * G                   # per-image lane segment (guard|plane|guard)

    # batch tiling: TB images per grid step; default keeps >=2 steps when N > 1
    # (v7x megacore) and caps the tile so VMEM stays small on every generation.
    if batch_tile is None:
        batch_tile = max(1, min(16, -(-N // 2)))
    TB = max(1, min(batch_tile, N))
    num_tiles = -(-N // TB)
    Np = num_tiles * TB
    L_out = TB * SEG
    L_in = L_out + 2 * G

    Cp = ((C_ext + 7) // 8) * 8        # sublane-pad input channels

    # (N, C_ext, H, W) -> batch-pad, channel-pad, spatial zero-pad, flatten plane,
    # place each image at offset G of its SEG-lane segment, concat TB segments.
    xp = jnp.pad(ext_in, ((0, Np - N), (0, Cp - C_ext), (1, 1), (1, 1)))
    xflat = xp.reshape(Np, Cp, Mp)
    xseg = jnp.pad(xflat, ((0, 0), (0, 0), (G, G)))                    # (Np, Cp, SEG)
    xg = xseg.reshape(num_tiles, TB, Cp, SEG).transpose(0, 2, 1, 3)
    xg = xg.reshape(num_tiles, Cp, L_out)
    xg = jnp.pad(xg, ((0, 0), (0, 0), (0, 2 * G)))                     # (nt, Cp, L_in)

    # mask of true interior (original HxW) positions inside each segment
    q = jnp.arange(Mp)
    r, c = q // Wp, q % Wp
    interior = ((r >= 1) & (r <= H) & (c >= 1) & (c <= W)).astype(jnp.float32)
    seg_mask = jnp.zeros((SEG,), jnp.float32).at[:Mp].set(interior)
    mask = jnp.tile(seg_mask, TB).reshape(1, L_out)

    # per-image center pick / segment broadcast matrices (for val[:, d, d])
    c_idx = (d + 1) * Wp + (d + 1)
    TBp = ((TB + 7) // 8) * 8
    cpick = jnp.zeros((L_out, TBp), jnp.float32).at[
        jnp.arange(TB) * SEG + c_idx, jnp.arange(TB)].set(1.0)
    cbcast = (jnp.arange(TBp)[:, None] == (jnp.arange(L_out) // SEG)[None, :]
              ).astype(jnp.float32)

    fw = build_fused_weights(params, total=total, c_ext=C_ext, cp=Cp)
    C1 = fw["w1"].shape[0]

    kern = functools.partial(_fused_kernel, Wp=Wp, G=G, GP=GP, L_out=L_out,
                             gamma=gamma, ext_coeff=ext_coeff)

    out = pl.pallas_call(
        kern,
        out_shape=jax.ShapeDtypeStruct((num_tiles, 1, L_out), jnp.float32),
        grid=(num_tiles,),
        in_specs=[
            pl.BlockSpec((1, Cp, L_in), lambda n: (n, 0, 0)),
            pl.BlockSpec((1, L_out), lambda n: (0, 0)),
            pl.BlockSpec((L_out, TBp), lambda n: (0, 0)),
            pl.BlockSpec((TBp, L_out), lambda n: (0, 0)),
            pl.BlockSpec((C1, 9 * Cp), lambda n: (0, 0)),
            pl.BlockSpec((C1, 1), lambda n: (0, 0)),
            pl.BlockSpec((C1, 9 * C1), lambda n: (0, 0)),
            pl.BlockSpec((C1, 1), lambda n: (0, 0)),
            pl.BlockSpec((3, C1), lambda n: (0, 0)),
            pl.BlockSpec((3, 1), lambda n: (0, 0)),
        ],
        out_specs=pl.BlockSpec((1, 1, L_out), lambda n: (n, 0, 0)),
        scratch_shapes=[
            pltpu.VMEM((9 * Cp, L_out), jnp.float32),        # layer-1 tap stack
            pltpu.VMEM((9 * C1, L_out), jnp.float32),        # layer-2 tap stack
            pltpu.VMEM((C1, L_out + 2 * GP), jnp.float32),   # guarded h1
        ],
        compiler_params=pltpu.CompilerParams(dimension_semantics=("parallel",)),
    )(xg, mask, cpick, cbcast,
      fw["w1"], fw["b1"], fw["w2"], fw["b2"], fw["w3"], fw["b3"])

    # (nt, 1, TB*SEG) -> per-image SEG rows -> padded plane -> crop to true HxW
    out = out.reshape(Np, SEG)[:, :Mp].reshape(Np, Hp, Wp)
    return out[:N, 1:H + 1, 1:W + 1]


# ----------------------------- reference (plain JAX / XLA) --------------------
def _conv_ref(x, w, b, act):
    y = lax.conv_general_dilated(
        x, w, window_strides=(1, 1), padding="SAME",
        dimension_numbers=("NHWC", "HWIO", "NHWC"))
    return act(y + b)


def _unet_ref(x, p):
    h = _conv_ref(x, p["w1"], p["b1"], _relu)
    h = _conv_ref(h, p["w2"], p["b2"], _relu)
    return _conv_ref(h, p["w3"], p["b3"], _neg_softplus)


def unet_dis_static_ref(params, x_nchw, pi_other_nchw, *, gamma=0.9, ext_coeff=1.0):
    d = (x_nchw.shape[-1] - 1) // 2
    x = jnp.transpose(x_nchw, (0, 2, 3, 1))
    pi = jnp.transpose(pi_other_nchw, (0, 2, 3, 1))
    util = _unet_ref(x, params["util"])[..., 0]
    val = _unet_ref(x, params["val"])[..., 0]
    ext = _unet_ref(jnp.concatenate([x, pi], axis=-1), params["ext"])[..., 0]
    center = val[:, d, d][:, None, None]
    return util + ext_coeff * ext + gamma * val - center


# ----------------------------- main -------------------------------------------
if __name__ == "__main__":
    key = jax.random.PRNGKey(0)
    feature_num, context_num, output_channel = 3, 1, 3
    hidden = 8
    total = feature_num + context_num

    kp, kdata = jax.random.split(key)
    params = init_unet_dis_static(kp, feature_num, context_num, output_channel, hidden)

    fwd = jax.jit(functools.partial(unet_dis_static_forward, gamma=0.9, ext_coeff=1.0))

    # two configs: (TB=1, even batch) and (TB=3, ragged batch with padding)
    for (N, H) in [(2, 9), (5, 7)]:
        kx, kpi, kdata = jax.random.split(kdata, 3)
        x = jax.random.normal(kx, (N, total, H, H), jnp.float32)                # NCHW
        pi_other = jax.random.normal(kpi, (N, output_channel - 1, H, H), jnp.float32)

        f_val = fwd(params, x, pi_other)
        jax.block_until_ready(f_val)

        ref = unet_dis_static_ref(params, x, pi_other, gamma=0.9, ext_coeff=1.0)
        assert f_val.shape == (N, H, H)
        err = float(jnp.max(jnp.abs(f_val - ref)))
        assert jnp.allclose(f_val, ref, atol=1e-4, rtol=1e-4), f"max abs err = {err}"

    print("KERNEL_OK")
</pallas_src>

<mosaic_0001>
module attributes {stable_mosaic.version = 11 : i64} {
  func.func @_fused_kernel(%arg0: i32, %arg1: memref<1x8x169xf32, #tpu.memory_space<vmem>>, %arg2: memref<1x145xf32, #tpu.memory_space<vmem>>, %arg3: memref<145x8xf32, #tpu.memory_space<vmem>>, %arg4: memref<8x145xf32, #tpu.memory_space<vmem>>, %arg5: memref<24x72xf32, #tpu.memory_space<vmem>>, %arg6: memref<24x1xf32, #tpu.memory_space<vmem>>, %arg7: memref<24x216xf32, #tpu.memory_space<vmem>>, %arg8: memref<24x1xf32, #tpu.memory_space<vmem>>, %arg9: memref<3x24xf32, #tpu.memory_space<vmem>>, %arg10: memref<3x1xf32, #tpu.memory_space<vmem>>, %arg11: memref<1x1x145xf32, #tpu.memory_space<vmem>>, %arg12: memref<72x145xf32, #tpu.memory_space<vmem>>, %arg13: memref<216x145xf32, #tpu.memory_space<vmem>>, %arg14: memref<24x401xf32, #tpu.memory_space<vmem>>) attributes {dimension_semantics = [#tpu.dimension_semantics<parallel>], iteration_bounds = array<i64: 2>, scalar_prefetch = 0 : i64, scratch_operands = 3 : i64, tpu.core_type = #tpu.core_type<tc>, window_params = [{transform_indices = @transform_0, window_bounds = array<i64: 1, 8, 169>}, {pipeline_mode = #tpu.pipeline_mode<synchronous>, transform_indices = @transform_1, window_bounds = array<i64: 1, 145>}, {pipeline_mode = #tpu.pipeline_mode<synchronous>, transform_indices = @transform_2, window_bounds = array<i64: 145, 8>}, {pipeline_mode = #tpu.pipeline_mode<synchronous>, transform_indices = @transform_3, window_bounds = array<i64: 8, 145>}, {pipeline_mode = #tpu.pipeline_mode<synchronous>, transform_indices = @transform_4, window_bounds = array<i64: 24, 72>}, {pipeline_mode = #tpu.pipeline_mode<synchronous>, transform_indices = @transform_5, window_bounds = array<i64: 24, 1>}, {pipeline_mode = #tpu.pipeline_mode<synchronous>, transform_indices = @transform_6, window_bounds = array<i64: 24, 216>}, {pipeline_mode = #tpu.pipeline_mode<synchronous>, transform_indices = @transform_7, window_bounds = array<i64: 24, 1>}, {pipeline_mode = #tpu.pipeline_mode<synchronous>, transform_indices = @transform_8, window_bounds = array<i64: 3, 24>}, {pipeline_mode = #tpu.pipeline_mode<synchronous>, transform_indices = @transform_9, window_bounds = array<i64: 3, 1>}, {transform_indices = @transform_10, window_bounds = array<i64: 1, 1, 145>}]} {
    %c0 = arith.constant 0 : index
    %c0_0 = arith.constant 0 : index
    %c0_1 = arith.constant 0 : index
    %0 = vector.load %arg1[%c0, %c0_0, %c0_1] : memref<1x8x169xf32, #tpu.memory_space<vmem>>, vector<1x8x145xf32>
    %1 = vector.shape_cast %0 : vector<1x8x145xf32> to vector<8x145xf32>
    %c0_2 = arith.constant 0 : index
    %c0_3 = arith.constant 0 : index
    %2 = vector.load %arg12[%c0_2, %c0_3] : memref<72x145xf32, #tpu.memory_space<vmem>>, vector<8x145xf32>
    tpu.vector_store %arg12[%c0_2, %c0_3], %1 {strides = array<i32>} : memref<72x145xf32, #tpu.memory_space<vmem>>, vector<8x145xf32>,
    %c0_4 = arith.constant 0 : index
    %c0_5 = arith.constant 0 : index
    %c1 = arith.constant 1 : index
    %3 = vector.load %arg1[%c0_4, %c0_5, %c1] : memref<1x8x169xf32, #tpu.memory_space<vmem>>, vector<1x8x145xf32>
    %4 = vector.shape_cast %3 : vector<1x8x145xf32> to vector<8x145xf32>
    %c8 = arith.constant 8 : index
    %c0_6 = arith.constant 0 : index
    %5 = vector.load %arg12[%c8, %c0_6] : memref<72x145xf32, #tpu.memory_space<vmem>>, vector<8x145xf32>
    tpu.vector_store %arg12[%c8, %c0_6], %4 {strides = array<i32>} : memref<72x145xf32, #tpu.memory_space<vmem>>, vector<8x145xf32>,
    %c0_7 = arith.constant 0 : index
    %c0_8 = arith.constant 0 : index
    %c2 = arith.constant 2 : index
    %6 = vector.load %arg1[%c0_7, %c0_8, %c2] : memref<1x8x169xf32, #tpu.memory_space<vmem>>, vector<1x8x145xf32>
    %7 = vector.shape_cast %6 : vector<1x8x145xf32> to vector<8x145xf32>
    %c16 = arith.constant 16 : index
    %c0_9 = arith.constant 0 : index
    %8 = vector.load %arg12[%c16, %c0_9] : memref<72x145xf32, #tpu.memory_space<vmem>>, vector<8x145xf32>
    tpu.vector_store %arg12[%c16, %c0_9], %7 {strides = array<i32>} : memref<72x145xf32, #tpu.memory_space<vmem>>, vector<8x145xf32>,
    %c0_10 = arith.constant 0 : index
    %c0_11 = arith.constant 0 : index
    %c11 = arith.constant 11 : index
    %9 = vector.load %arg1[%c0_10, %c0_11, %c11] : memref<1x8x169xf32, #tpu.memory_space<vmem>>, vector<1x8x145xf32>
    %10 = vector.shape_cast %9 : vector<1x8x145xf32> to vector<8x145xf32>
    %c24 = arith.constant 24 : index
    %c0_12 = arith.constant 0 : index
    %11 = vector.load %arg12[%c24, %c0_12] : memref<72x145xf32, #tpu.memory_space<vmem>>, vector<8x145xf32>
    tpu.vector_store %arg12[%c24, %c0_12], %10 {strides = array<i32>} : memref<72x145xf32, #tpu.memory_space<vmem>>, vector<8x145xf32>,
    %c0_13 = arith.constant 0 : index
    %c0_14 = arith.constant 0 : index
    %c12 = arith.constant 12 : index
    %12 = vector.load %arg1[%c0_13, %c0_14, %c12] : memref<1x8x169xf32, #tpu.memory_space<vmem>>, vector<1x8x145xf32>
    %13 = vector.shape_cast %12 : vector<1x8x145xf32> to vector<8x145xf32>
    %c32 = arith.constant 32 : index
    %c0_15 = arith.constant 0 : index
    %14 = vector.load %arg12[%c32, %c0_15] : memref<72x145xf32, #tpu.memory_space<vmem>>, vector<8x145xf32>
    tpu.vector_store %arg12[%c32, %c0_15], %13 {strides = array<i32>} : memref<72x145xf32, #tpu.memory_space<vmem>>, vector<8x145xf32>,
    %c0_16 = arith.constant 0 : index
    %c0_17 = arith.constant 0 : index
    %c13 = arith.constant 13 : index
    %15 = vector.load %arg1[%c0_16, %c0_17, %c13] : memref<1x8x169xf32, #tpu.memory_space<vmem>>, vector<1x8x145xf32>
    %16 = vector.shape_cast %15 : vector<1x8x145xf32> to vector<8x145xf32>
    %c40 = arith.constant 40 : index
    %c0_18 = arith.constant 0 : index
    %17 = vector.load %arg12[%c40, %c0_18] : memref<72x145xf32, #tpu.memory_space<vmem>>, vector<8x145xf32>
    tpu.vector_store %arg12[%c40, %c0_18], %16 {strides = array<i32>} : memref<72x145xf32, #tpu.memory_space<vmem>>, vector<8x145xf32>,
    %c0_19 = arith.constant 0 : index
    %c0_20 = arith.constant 0 : index
    %c22 = arith.constant 22 : index
    %18 = vector.load %arg1[%c0_19, %c0_20, %c22] : memref<1x8x169xf32, #tpu.memory_space<vmem>>, vector<1x8x145xf32>
    %19 = vector.shape_cast %18 : vector<1x8x145xf32> to vector<8x145xf32>
    %c48 = arith.constant 48 : index
    %c0_21 = arith.constant 0 : index
    %20 = vector.load %arg12[%c48, %c0_21] : memref<72x145xf32, #tpu.memory_space<vmem>>, vector<8x145xf32>
    tpu.vector_store %arg12[%c48, %c0_21], %19 {strides = array<i32>} : memref<72x145xf32, #tpu.memory_space<vmem>>, vector<8x145xf32>,
    %c0_22 = arith.constant 0 : index
    %c0_23 = arith.constant 0 : index
    %c23 = arith.constant 23 : index
    %21 = vector.load %arg1[%c0_22, %c0_23, %c23] : memref<1x8x169xf32, #tpu.memory_space<vmem>>, vector<1x8x145xf32>
    %22 = vector.shape_cast %21 : vector<1x8x145xf32> to vector<8x145xf32>
    %c56 = arith.constant 56 : index
    %c0_24 = arith.constant 0 : index
    %23 = vector.load %arg12[%c56, %c0_24] : memref<72x145xf32, #tpu.memory_space<vmem>>, vector<8x145xf32>
    tpu.vector_store %arg12[%c56, %c0_24], %22 {strides = array<i32>} : memref<72x145xf32, #tpu.memory_space<vmem>>, vector<8x145xf32>,
    %c0_25 = arith.constant 0 : index
    %c0_26 = arith.constant 0 : index
    %c24_27 = arith.constant 24 : index
    %24 = vector.load %arg1[%c0_25, %c0_26, %c24_27] : memref<1x8x169xf32, #tpu.memory_space<vmem>>, vector<1x8x145xf32>
    %25 = vector.shape_cast %24 : vector<1x8x145xf32> to vector<8x145xf32>
    %c64 = arith.constant 64 : index
    %c0_28 = arith.constant 0 : index
    %26 = vector.load %arg12[%c64, %c0_28] : memref<72x145xf32, #tpu.memory_space<vmem>>, vector<8x145xf32>
    tpu.vector_store %arg12[%c64, %c0_28], %25 {strides = array<i32>} : memref<72x145xf32, #tpu.memory_space<vmem>>, vector<8x145xf32>,
    %c0_29 = arith.constant 0 : index
    %c0_30 = arith.constant 0 : index
    %27 = vector.load %arg5[%c0_29, %c0_30] : memref<24x72xf32, #tpu.memory_space<vmem>>, vector<24x72xf32>
    %c0_31 = arith.constant 0 : index
    %c0_32 = arith.constant 0 : index
    %28 = vector.load %arg12[%c0_31, %c0_32] : memref<72x145xf32, #tpu.memory_space<vmem>>, vector<72x145xf32>
    %cst = arith.constant dense<0.000000e+00> : vector<24x145xf32>
    %29 = tpu.matmul %27, %28, %cst {dimension_numbers = #tpu.dot_dimension_numbers<[1], [0], [0], [1], [0, 0, 1, 1], [], []>} : vector<24x72xf32>, vector<72x145xf32>, vector<24x145xf32> -> vector<24x145xf32>
    %c0_33 = arith.constant 0 : index
    %c0_34 = arith.constant 0 : index
    %30 = vector.load %arg6[%c0_33, %c0_34] : memref<24x1xf32, #tpu.memory_space<vmem>>, vector<24x1xf32>
    %31 = vector.broadcast %30 : vector<24x1xf32> to vector<24x145xf32>
    %32 = arith.addf %29, %31 : vector<24x145xf32>
    %cst_35 = arith.constant 0.000000e+00 : f32
    %33 = vector.broadcast %cst_35 : f32 to vector<24x145xf32>
    %34 = arith.maximumf %32, %33 : vector<24x145xf32>
    %cst_36 = arith.constant 0.000000e+00 : f32
    %35 = vector.broadcast %cst_36 : f32 to vector<24x128xf32>
    %c0_37 = arith.constant 0 : index
    %c0_38 = arith.constant 0 : index
    %36 = vector.load %arg14[%c0_37, %c0_38] : memref<24x401xf32, #tpu.memory_space<vmem>>, vector<24x128xf32>
    tpu.vector_store %arg14[%c0_37, %c0_38], %35 {strides = array<i32>} : memref<24x401xf32, #tpu.memory_space<vmem>>, vector<24x128xf32>,
    %cst_39 = arith.constant 0.000000e+00 : f32
    %37 = vector.broadcast %cst_39 : f32 to vector<24x128xf32>
    %c0_40 = arith.constant 0 : index
    %c273 = arith.constant 273 : index
    %38 = vector.load %arg14[%c0_40, %c273] : memref<24x401xf32, #tpu.memory_space<vmem>>, vector<24x128xf32>
    tpu.vector_store %arg14[%c0_40, %c273], %37 {strides = array<i32>} : memref<24x401xf32, #tpu.memory_space<vmem>>, vector<24x128xf32>,
    %c0_41 = arith.constant 0 : index
    %c0_42 = arith.constant 0 : index
    %39 = vector.load %arg2[%c0_41, %c0_42] : memref<1x145xf32, #tpu.memory_space<vmem>>, vector<1x145xf32>
    %40 = vector.broadcast %39 : vector<1x145xf32> to vector<24x145xf32>
    %41 = arith.mulf %34, %40 : vector<24x145xf32>
    %c0_43 = arith.constant 0 : index
    %c128 = arith.constant 128 : index
    %42 = vector.load %arg14[%c0_43, %c128] : memref<24x401xf32, #tpu.memory_space<vmem>>, vector<24x145xf32>
    tpu.vector_store %arg14[%c0_43, %c128], %41 {strides = array<i32>} : memref<24x401xf32, #tpu.memory_space<vmem>>, vector<24x145xf32>,
    %c0_44 = arith.constant 0 : index
    %c116 = arith.constant 116 : index
    %43 = vector.load %arg14[%c0_44, %c116] : memref<24x401xf32, #tpu.memory_space<vmem>>, vector<24x145xf32>
    %c0_45 = arith.constant 0 : index
    %c0_46 = arith.constant 0 : index
    %44 = vector.load %arg13[%c0_45, %c0_46] : memref<216x145xf32, #tpu.memory_space<vmem>>, vector<24x145xf32>
    tpu.vector_store %arg13[%c0_45, %c0_46], %43 {strides = array<i32>} : memref<216x145xf32, #tpu.memory_space<vmem>>, vector<24x145xf32>,
    %c0_47 = arith.constant 0 : index
    %c117 = arith.constant 117 : index
    %45 = vector.load %arg14[%c0_47, %c117] : memref<24x401xf32, #tpu.memory_space<vmem>>, vector<24x145xf32>
    %c24_48 = arith.constant 24 : index
    %c0_49 = arith.constant 0 : index
    %46 = vector.load %arg13[%c24_48, %c0_49] : memref<216x145xf32, #tpu.memory_space<vmem>>, vector<24x145xf32>
    tpu.vector_store %arg13[%c24_48, %c0_49], %45 {strides = array<i32>} : memref<216x145xf32, #tpu.memory_space<vmem>>, vector<24x145xf32>,
    %c0_50 = arith.constant 0 : index
    %c118 = arith.constant 118 : index
    %47 = vector.load %arg14[%c0_50, %c118] : memref<24x401xf32, #tpu.memory_space<vmem>>, vector<24x145xf32>
    %c48_51 = arith.constant 48 : index
    %c0_52 = arith.constant 0 : index
    %48 = vector.load %arg13[%c48_51, %c0_52] : memref<216x145xf32, #tpu.memory_space<vmem>>, vector<24x145xf32>
    tpu.vector_store %arg13[%c48_51, %c0_52], %47 {strides = array<i32>} : memref<216x145xf32, #tpu.memory_space<vmem>>, vector<24x145xf32>,
    %c0_53 = arith.constant 0 : index
    %c127 = arith.constant 127 : index
    %49 = vector.load %arg14[%c0_53, %c127] : memref<24x401xf32, #tpu.memory_space<vmem>>, vector<24x145xf32>
    %c72 = arith.constant 72 : index
    %c0_54 = arith.constant 0 : index
    %50 = vector.load %arg13[%c72, %c0_54] : memref<216x145xf32, #tpu.memory_space<vmem>>, vector<24x145xf32>
    tpu.vector_store %arg13[%c72, %c0_54], %49 {strides = array<i32>} : memref<216x145xf32, #tpu.memory_space<vmem>>, vector<24x145xf32>,
    %c0_55 = arith.constant 0 : index
    %c128_56 = arith.constant 128 : index
    %51 = vector.load %arg14[%c0_55, %c128_56] : memref<24x401xf32, #tpu.memory_space<vmem>>, vector<24x145xf32>
    %c96 = arith.constant 96 : index
    %c0_57 = arith.constant 0 : index
    %52 = vector.load %arg13[%c96, %c0_57] : memref<216x145xf32, #tpu.memory_space<vmem>>, vector<24x145xf32>
    tpu.vector_store %arg13[%c96, %c0_57], %51 {strides = array<i32>} : memref<216x145xf32, #tpu.memory_space<vmem>>, vector<24x145xf32>,
    %c0_58 = arith.constant 0 : index
    %c129 = arith.constant 129 : index
    %53 = vector.load %arg14[%c0_58, %c129] : memref<24x401xf32, #tpu.memory_space<vmem>>, vector<24x145xf32>
    %c120 = arith.constant 120 : index
    %c0_59 = arith.constant 0 : index
    %54 = vector.load %arg13[%c120, %c0_59] : memref<216x145xf32, #tpu.memory_space<vmem>>, vector<24x145xf32>
    tpu.vector_store %arg13[%c120, %c0_59], %53 {strides = array<i32>} : memref<216x145xf32, #tpu.memory_space<vmem>>, vector<24x145xf32>,
    %c0_60 = arith.constant 0 : index
    %c138 = arith.constant 138 : index
    %55 = vector.load %arg14[%c0_60, %c138] : memref<24x401xf32, #tpu.memory_space<vmem>>, vector<24x145xf32>
    %c144 = arith.constant 144 : index
    %c0_61 = arith.constant 0 : index
    %56 = vector.load %arg13[%c144, %c0_61] : memref<216x145xf32, #tpu.memory_space<vmem>>, vector<24x145xf32>
    tpu.vector_store %arg13[%c144, %c0_61], %55 {strides = array<i32>} : memref<216x145xf32, #tpu.memory_space<vmem>>, vector<24x145xf32>,
    %c0_62 = arith.constant 0 : index
    %c139 = arith.constant 139 : index
    %57 = vector.load %arg14[%c0_62, %c139] : memref<24x401xf32, #tpu.memory_space<vmem>>, vector<24x145xf32>
    %c168 = arith.constant 168 : index
    %c0_63 = arith.constant 0 : index
    %58 = vector.load %arg13[%c168, %c0_63] : memref<216x145xf32, #tpu.memory_space<vmem>>, vector<24x145xf32>
    tpu.vector_store %arg13[%c168, %c0_63], %57 {strides = array<i32>} : memref<216x145xf32, #tpu.memory_space<vmem>>, vector<24x145xf32>,
    %c0_64 = arith.constant 0 : index
    %c140 = arith.constant 140 : index
    %59 = vector.load %arg14[%c0_64, %c140] : memref<24x401xf32, #tpu.memory_space<vmem>>, vector<24x145xf32>
    %c192 = arith.constant 192 : index
    %c0_65 = arith.constant 0 : index
    %60 = vector.load %arg13[%c192, %c0_65] : memref<216x145xf32, #tpu.memory_space<vmem>>, vector<24x145xf32>
    tpu.vector_store %arg13[%c192, %c0_65], %59 {strides = array<i32>} : memref<216x145xf32, #tpu.memory_space<vmem>>, vector<24x145xf32>,
    %c0_66 = arith.constant 0 : index
    %c0_67 = arith.constant 0 : index
    %61 = vector.load %arg7[%c0_66, %c0_67] : memref<24x216xf32, #tpu.memory_space<vmem>>, vector<24x216xf32>
    %c0_68 = arith.constant 0 : index
    %c0_69 = arith.constant 0 : index
    %62 = vector.load %arg13[%c0_68, %c0_69] : memref<216x145xf32, #tpu.memory_space<vmem>>, vector<216x145xf32>
    %cst_70 = arith.constant dense<0.000000e+00> : vector<24x145xf32>
    %63 = tpu.matmul %61, %62, %cst_70 {dimension_numbers = #tpu.dot_dimension_numbers<[1], [0], [0], [1], [0, 0, 1, 1], [], []>} : vector<24x216xf32>, vector<216x145xf32>, vector<24x145xf32> -> vector<24x145xf32>
    %c0_71 = arith.constant 0 : index
    %c0_72 = arith.constant 0 : index
    %64 = vector.load %arg8[%c0_71, %c0_72] : memref<24x1xf32, #tpu.memory_space<vmem>>, vector<24x1xf32>
    %65 = vector.broadcast %64 : vector<24x1xf32> to vector<24x145xf32>
    %66 = arith.addf %63, %65 : vector<24x145xf32>
    %cst_73 = arith.constant 0.000000e+00 : f32
    %67 = vector.broadcast %cst_73 : f32 to vector<24x145xf32>
    %68 = arith.maximumf %66, %67 : vector<24x145xf32>
    %c0_74 = arith.constant 0 : index
    %c0_75 = arith.constant 0 : index
    %69 = vector.load %arg9[%c0_74, %c0_75] : memref<3x24xf32, #tpu.memory_space<vmem>>, vector<3x24xf32>
    %cst_76 = arith.constant dense<0.000000e+00> : vector<3x145xf32>
    %70 = tpu.matmul %69, %68, %cst_76 {dimension_numbers = #tpu.dot_dimension_numbers<[1], [0], [0], [1], [0, 0, 1, 1], [], []>} : vector<3x24xf32>, vector<24x145xf32>, vector<3x145xf32> -> vector<3x145xf32>
    %c0_77 = arith.constant 0 : index
    %c0_78 = arith.constant 0 : index
    %71 = vector.load %arg10[%c0_77, %c0_78] : memref<3x1xf32, #tpu.memory_space<vmem>>, vector<3x1xf32>
    %72 = vector.broadcast %71 : vector<3x1xf32> to vector<3x145xf32>
    %73 = arith.addf %70, %72 : vector<3x145xf32>
    %cst_79 = arith.constant 0.000000e+00 : f32
    %74 = vector.broadcast %cst_79 : f32 to vector<3x145xf32>
    %75 = arith.maximumf %73, %74 : vector<3x145xf32>
    %76 = math.absf %73 : vector<3x145xf32>
    %cst_80 = arith.constant 0.000000e+00 : f32
    %77 = vector.broadcast %cst_80 : f32 to vector<3x145xf32>
    %78 = arith.subf %77, %76 : vector<3x145xf32>
    %79 = math.exp %78 : vector<3x145xf32>
    %80 = math.log1p %79 : vector<3x145xf32>
    %81 = arith.addf %75, %80 : vector<3x145xf32>
    %cst_81 = arith.constant 0.000000e+00 : f32
    %82 = vector.broadcast %cst_81 : f32 to vector<3x145xf32>
    %83 = arith.subf %82, %81 : vector<3x145xf32>
    %84 = vector.extract_strided_slice %83 {offsets = [0, 0], sizes = [1, 145], strides = [1, 1]} : vector<3x145xf32> to vector<1x145xf32>
    %85 = vector.extract_strided_slice %83 {offsets = [1, 0], sizes = [1, 145], strides = [1, 1]} : vector<3x145xf32> to vector<1x145xf32>
    %86 = vector.extract_strided_slice %83 {offsets = [2, 0], sizes = [1, 145], strides = [1, 1]} : vector<3x145xf32> to vector<1x145xf32>
    %c0_82 = arith.constant 0 : index
    %c0_83 = arith.constant 0 : index
    %87 = vector.load %arg3[%c0_82, %c0_83] : memref<145x8xf32, #tpu.memory_space<vmem>>, vector<145x8xf32>
    %cst_84 = arith.constant dense<0.000000e+00> : vector<1x8xf32>
    %88 = tpu.matmul %86, %87, %cst_84 {dimension_numbers = #tpu.dot_dimension_numbers<[1], [0], [0], [1], [0, 0, 1, 1], [], []>} : vector<1x145xf32>, vector<145x8xf32>, vector<1x8xf32> -> vector<1x8xf32>
    %c0_85 = arith.constant 0 : index
    %c0_86 = arith.constant 0 : index
    %89 = vector.load %arg4[%c0_85, %c0_86] : memref<8x145xf32, #tpu.memory_space<vmem>>, vector<8x145xf32>
    %cst_87 = arith.constant dense<0.000000e+00> : vector<1x145xf32>
    %90 = tpu.matmul %88, %89, %cst_87 {dimension_numbers = #tpu.dot_dimension_numbers<[1], [0], [0], [1], [0, 0, 1, 1], [], []>} : vector<1x8xf32>, vector<8x145xf32>, vector<1x145xf32> -> vector<1x145xf32>
    %cst_88 = arith.constant 1.000000e+00 : f32
    %91 = vector.broadcast %cst_88 : f32 to vector<1x145xf32>
    %92 = arith.mulf %91, %85 : vector<1x145xf32>
    %93 = arith.addf %84, %92 : vector<1x145xf32>
    %cst_89 = arith.constant 0.899999976 : f32
    %94 = vector.broadcast %cst_89 : f32 to vector<1x145xf32>
    %95 = arith.mulf %94, %86 : vector<1x145xf32>
    %96 = arith.addf %93, %95 : vector<1x145xf32>
    %97 = arith.subf %96, %90 : vector<1x145xf32>
    %c0_90 = arith.constant 0 : index
    %c0_91 = arith.constant 0 : index
    %c0_92 = arith.constant 0 : index
    %98 = vector.load %arg11[%c0_90, %c0_91, %c0_92] : memref<1x1x145xf32, #tpu.memory_space<vmem>>, vector<1x1x145xf32>
    %99 = vector.shape_cast %98 : vector<1x1x145xf32> to vector<1x145xf32>
    %100 = vector.shape_cast %97 : vector<1x145xf32> to vector<1x1x145xf32>
    tpu.vector_store %arg11[%c0_90, %c0_91, %c0_92], %100 {strides = array<i32>} : memref<1x1x145xf32, #tpu.memory_space<vmem>>, vector<1x1x145xf32>,
    return
  }
  func.func @transform_0(%arg0: i32) -> (i32, i32, i32) {
    %c0_i32 = arith.constant 0 : i32
    %c0_i32_0 = arith.constant 0 : i32
    %c0_i32_1 = arith.constant 0 : i32
    return %arg0, %c0_i32, %c0_i32_0 : i32, i32, i32
  }
  func.func @transform_1(%arg0: i32) -> (i32, i32) {
    %c0_i32 = arith.constant 0 : i32
    %c0_i32_0 = arith.constant 0 : i32
    %c0_i32_1 = arith.constant 0 : i32
    return %c0_i32, %c0_i32_0 : i32, i32
  }
  func.func @transform_2(%arg0: i32) -> (i32, i32) {
    %c0_i32 = arith.constant 0 : i32
    %c0_i32_0 = arith.constant 0 : i32
    %c0_i32_1 = arith.constant 0 : i32
    return %c0_i32, %c0_i32_0 : i32, i32
  }
  func.func @transform_3(%arg0: i32) -> (i32, i32) {
    %c0_i32 = arith.constant 0 : i32
    %c0_i32_0 = arith.constant 0 : i32
    %c0_i32_1 = arith.constant 0 : i32
    return %c0_i32, %c0_i32_0 : i32, i32
  }
  func.func @transform_4(%arg0: i32) -> (i32, i32) {
    %c0_i32 = arith.constant 0 : i32
    %c0_i32_0 = arith.constant 0 : i32
    %c0_i32_1 = arith.constant 0 : i32
    return %c0_i32, %c0_i32_0 : i32, i32
  }
  func.func @transform_5(%arg0: i32) -> (i32, i32) {
    %c0_i32 = arith.constant 0 : i32
    %c0_i32_0 = arith.constant 0 : i32
    %c0_i32_1 = arith.constant 0 : i32
    return %c0_i32, %c0_i32_0 : i32, i32
  }
  func.func @transform_6(%arg0: i32) -> (i32, i32) {
    %c0_i32 = arith.constant 0 : i32
    %c0_i32_0 = arith.constant 0 : i32
    %c0_i32_1 = arith.constant 0 : i32
    return %c0_i32, %c0_i32_0 : i32, i32
  }
  func.func @transform_7(%arg0: i32) -> (i32, i32) {
    %c0_i32 = arith.constant 0 : i32
    %c0_i32_0 = arith.constant 0 : i32
    %c0_i32_1 = arith.constant 0 : i32
    return %c0_i32, %c0_i32_0 : i32, i32
  }
  func.func @transform_8(%arg0: i32) -> (i32, i32) {
    %c0_i32 = arith.constant 0 : i32
    %c0_i32_0 = arith.constant 0 : i32
    %c0_i32_1 = arith.constant 0 : i32
    return %c0_i32, %c0_i32_0 : i32, i32
  }
  func.func @transform_9(%arg0: i32) -> (i32, i32) {
    %c0_i32 = arith.constant 0 : i32
    %c0_i32_0 = arith.constant 0 : i32
    %c0_i32_1 = arith.constant 0 : i32
    return %c0_i32, %c0_i32_0 : i32, i32
  }
  func.func @transform_10(%arg0: i32) -> (i32, i32, i32) {
    %c0_i32 = arith.constant 0 : i32
    %c0_i32_0 = arith.constant 0 : i32
    %c0_i32_1 = arith.constant 0 : i32
    return %arg0, %c0_i32, %c0_i32_0 : i32, i32, i32
  }
}

</mosaic_0001>

<bundles_post_ra>
// kernel: unet_dis_static_forward.1
= control target key start
LH: loop header
LB: loop body
LE: loop exit
PB: predicated region body
PF: predicated region fallthrough
CT: control target
= control target key end

     0   :  { %s1854_s13 = smov 0   ;;  %s2243_s0 = inlined_call_operand.vmem [shape: f32[2,8,169], index: 0, kind: input, shape index: {}]   ;;  %s2244_s1 = inlined_call_operand.vmem [shape: f32[1,145], index: 1, kind: input, shape index: {}]   ;;  %s2245_s2 = inlined_call_operand.vmem [shape: f32[145,8], index: 2, kind: input, shape index: {}]   ;;  %s2246_s3 = inlined_call_operand.vmem [shape: f32[8,145], index: 3, kind: input, shape index: {}]   ;;  %s2247_s4 = inlined_call_operand.vmem [shape: f32[24,72], index: 4, kind: input, shape index: {}]   ;;  %s2248_s5 = inlined_call_operand.vmem [shape: f32[24,1], index: 5, kind: input, shape index: {}]   ;;  %s2249_s6 = inlined_call_operand.vmem [shape: f32[24,216], index: 6, kind: input, shape index: {}]   ;;  %s2250_s7 = inlined_call_operand.vmem [shape: f32[24,1], index: 7, kind: input, shape index: {}]   ;;  %s2251_s8 = inlined_call_operand.vmem [shape: f32[3,24], index: 8, kind: input, shape index: {}]   ;;  %s2252_s9 = inlined_call_operand.vmem [shape: f32[3,1], index: 9, kind: input, shape index: {}]   ;;  %s2253_s10 = inlined_call_operand.vmem [shape: f32[2,1,145], index: 10, kind: output, shape index: {}]  }
   0x1 LB: > { %s1598_s14 = sadd.s32 4294967295, %s1780_s13   ;;  %p1602_p0 = scmp.ge.s32.totalorder %s1780_s13, 1  ;;  %s1780_s13 = sphi %s1854_s13, %s20_s13  }
   0x2   : > { %p312_p1 = scmp.lt.s32.totalorder %s1780_s13, 3 }
   0x4   : > { %p313_p2 = pnand %p1602_p0, %p312_p1 }
   0x5   : > { %p349_p3 = scmp.lt.s32.totalorder (!%p313_p2), %s1598_s14, 1  ;;  %vm361_vm0 = vcmask (!%p313_p2), 138240   ;;  %s1782_s19 = smov (!%p313_p2), 126   ;;  %v1789_v2 = vmov (!%p313_p2), 0.0   ;;  %v496_v3 = vld [vmem:[%s2248_s5] sm:$0xff] (!%p313_p2)  ;;  %v497_v4 = vld [vmem:[%s2248_s5 + $0x8] sm:$0xff] (!%p313_p2)  ;;  %v625_v51 = vlaneseq (!%p313_p2) }
   0x6   : > { %316 = sbr.rel (%p313_p2) target bundleno = 1528 (0x5f8), region = 60  ;;  %s1783_s20 = smov (!%p313_p2), 127   ;;  %588 = vmatprep.mubr.f32.mxu0 (!%p313_p2), %v1789_v2  ;;  %613 = vst [vmem:[#allocation4] sm:$0xff] (!%p313_p2), %v1789_v2  ;;  %v1791_v5 = vmov (!%p313_p2), 0   ;;  %v498_v6 = vld [vmem:[%s2248_s5 + $0x10] sm:$0xff] (!%p313_p2)  ;;  %vm385_vm1 = vcmask (!%p313_p2), 1031168  }
   0x7   : > { %s1784_s21 = smov (!%p313_p2), 117   ;;  %s1785_s22 = smov (!%p313_p2), 116   ;;  %1743 = vset.pattern.permute.xlu0 (!%p313_p2), %v1791_v5  ;;  %1744 = vset.pattern.permute.xlu1 (!%p313_p2), %v1791_v5  ;;  %vm371_vm2 = vcmask (!%p313_p2), 1039360   ;;  %vm399_vm3 = vcmask (!%p313_p2), 957440   ;;  %vm413_vm4 = vcmask (!%p313_p2), 949248   ;;  %vm427_vm5 = vcmask (!%p313_p2), 941056  }
   0x8   : > { %s1786_s23 = smov (!%p313_p2), 115   ;;  %s1787_s24 = smov (!%p313_p2), 106   ;;  %vm441_vm6 = vcmask (!%p313_p2), 867328   ;;  %vm455_vm7 = vcmask (!%p313_p2), 859136   ;;  %vm469_vm8 = vcmask (!%p313_p2), 850944   ;;  %v475_v48 = vld [vmem:[%s2247_s4] sm:$0xff] (!%p313_p2) }
   0x9   : > { %s1788_s25 = smov (!%p313_p2), 105   ;;  %s1790_s26 = smov (!%p313_p2), 104   ;;  %vm514_vm9 = vcmask (!%p313_p2), 588800   ;;  %v476_v49 = vld [vmem:[%s2247_s4 + $0x8] sm:$0xff] (!%p313_p2)  ;;  %v477_v50 = vld [vmem:[%s2247_s4 + $0x10] sm:$0xff] (!%p313_p2)  ;;  %vm616_vm10 = vcmask (!%p313_p2), 1047688  }
   0xa   : > { %s1795_s27 = smov (!%p313_p2), 1   ;;  %617 = vst.msk [vmem:[#allocation4 + $0x10] sm:$0xff] (!%p313_p2), %vm616_vm10, %v1789_v2  ;;  %619 = vst.msk [vmem:[#allocation4 + $0x30] sm:$0xff] (!%p313_p2), %vm616_vm10, %v1789_v2  ;;  %v1940_v52 = vshrl.u32 (!%p313_p2), %v625_v51, 7  ;;  %v623_v55 = vld [vmem:[%s2244_s1] sm:$0x3] (!%p313_p2) }
   0xb   : > { %621 = vst.msk [vmem:[#allocation4 + $0x50] sm:$0xff] (!%p313_p2), %vm616_vm10, %v1789_v2  ;;  %s1796_s30 = smov (!%p313_p2), 118   ;;  %vm1114_vm11 = vcmask (!%p313_p2), 719872   ;;  %vm738_vm12 = vcmask (!%p313_p2), 89088   ;;  %vm683_vm13 = vcmask (!%p313_p2), 97280   ;;  %vm848_vm14 = vcmask (!%p313_p2), 7168  }
   0xc   : > { %v627_v53 = vsub.s32 (!%p313_p2), 0, %v1940_v52  ;;  %v631_v56 = vsub.s32 (!%p313_p2), 1, %v1940_v52  ;;  %vm793_vm15 = vcmask (!%p313_p2), 80896  }
   0xd   : > { %s2255_s14 = smov (!%p349_p3, %s1598_s14), 1 }
   0xe   : > { %s1618_s15 = sshll.u32 %s2255_s14, 4  ;;  %v628_v59 = vrot.slane %v623_v55, %v627_v53  ;;  %v632_v62 = vrot.slane %v623_v55, %v631_v56 }
   0xf   : > { %s353_s18 = scalar_lea.vmem %s2243_s0, %s1618_s15  ;;  %s1792_s15 = smov 12  }
  0x10   : > { %v1868_v0 = vld [vmem:[%s353_s18] sm:$0xff]  ;;  %v378_v1 = vld [vmem:[%s353_s18 + $0x8] sm:$0xff] }
  0x11   : > { %381 = vrot.lane.b32.xlu1 %v1868_v0, %s1782_s19  ;;  %367 = vrot.lane.b32.xlu0 %v1868_v0, %s1783_s20  ;;  %362 = vst.msk [vmem:[#allocation2 + $0x8] sm:$0xff] %vm361_vm0, %v378_v1 }
  0x15   : > { %383 = vrot.lane.b32.xlu1 %v378_v1, %s1782_s19  ;;  %369 = vrot.lane.b32.xlu0 %v378_v1, %s1783_s20 }
  0x18   : > { %v479_v16 = vld [vmem:[#allocation2 + $0x8] sm:$0xff] }
  0x19   : > { %397 = vrot.lane.b32.xlu1 %v378_v1, %s1784_s21  ;;  %395 = vrot.lane.b32.xlu0 %v1868_v0, %s1784_s21 }
  0x1d   : > { %411 = vrot.lane.b32.xlu1 %v378_v1, %s1785_s22  ;;  %409 = vrot.lane.b32.xlu0 %v1868_v0, %s1785_s22 }
  0x21   : > { %425 = vrot.lane.b32.xlu1 %v378_v1, %s1786_s23  ;;  %423 = vrot.lane.b32.xlu0 %v1868_v0, %s1786_s23 }
  0x25   : > { %439 = vrot.lane.b32.xlu1 %v378_v1, %s1787_s24  ;;  %437 = vrot.lane.b32.xlu0 %v1868_v0, %s1787_s24 }
  0x29   : > { %453 = vrot.lane.b32.xlu1 %v378_v1, %s1788_s25  ;;  %451 = vrot.lane.b32.xlu0 %v1868_v0, %s1788_s25  ;;  %s1793_s25 = smov 11  }
  0x2d   : > { %467 = vrot.lane.b32.xlu1 %v378_v1, %s1790_s26  ;;  %465 = vrot.lane.b32.xlu0 %v1868_v0, %s1790_s26  ;;  %s1794_s26 = smov 10  }
  0x31   : > { %501 = vperm.xlu0 %1743, %v496_v3   ;;  %506 = vperm.xlu1 %1744, %v497_v4  }
  0x35   : > { %511 = vperm.xlu1 %1744, %v498_v6   ;;  %1746 = vrot.lane.b32.xlu0 %v1789_v2, %s1792_s15 }
  0x39   : > { %677 = vrot.lane.b32.xlu1 %v1789_v2, %s1792_s15  ;;  %1751 = vrot.lane.b32.xlu0 %v1789_v2, %s1793_s25 }
  0x3d   : > { %732 = vrot.lane.b32.xlu1 %v1789_v2, %s1793_s25  ;;  %1756 = vrot.lane.b32.xlu0 %v1789_v2, %s1794_s26 }
  0x41   : > { %787 = vrot.lane.b32.xlu1 %v1789_v2, %s1794_s26  ;;  %1761 = vrot.lane.b32.xlu0 %v1789_v2, %s1795_s27 }
  0x45   : > { %842 = vrot.lane.b32.xlu1 %v1789_v2, %s1795_s27 }
  0x83   : > { %v382_v7 = vpop.permute.xlu1 %381  ;;  %v368_v8 = vpop.permute.xlu0 %367 }
  0x87   : > { %v384_v9 = vpop.permute.xlu1 %383  ;;  %v370_v10 = vpop.permute.xlu0 %369 }
  0x88   : > { %v386_v11 = vsel %vm385_vm1, %v382_v7, %v384_v9  ;;  %390 = vst.msk [vmem:[#allocation2 + $0x28] sm:$0xff] %vm361_vm0, %v384_v9  ;;  %v372_v12 = vsel %vm371_vm2, %v368_v8, %v370_v10  ;;  %376 = vst.msk [vmem:[#allocation2 + $0x18] sm:$0xff] %vm361_vm0, %v370_v10  ;;  %vm942_vm1 = vcmask 965632  }
  0x89   : > { %v1621_v22 = vpack.c.bf16 %v372_v12, %v1868_v0 }
  0x8b   : > { %v398_v13 = vpop.permute.xlu1 %397  ;;  %v396_v14 = vpop.permute.xlu0 %395 }
  0x8c   : > { %404 = vst.msk [vmem:[#allocation2 + $0x38] sm:$0xff] %vm361_vm0, %v398_v13  ;;  %v400_v15 = vsel %vm399_vm3, %v396_v14, %v398_v13 }
  0x8d   : > { %v1625_v29 = vpack.c.bf16 %v400_v15, %v386_v11 }
  0x8f   : > { %v412_v17 = vpop.permute.xlu1 %411  ;;  %v410_v18 = vpop.permute.xlu0 %409  ;;  %v481_v19 = vld [vmem:[#allocation2 + $0x18] sm:$0xff]  ;;  %v483_v25 = vld [vmem:[#allocation2 + $0x28] sm:$0xff] }
  0x90   : > { %418 = vst.msk [vmem:[#allocation2 + $0x48] sm:$0xff] %vm361_vm0, %v412_v17  ;;  %v414_v20 = vsel %vm413_vm4, %v410_v18, %v412_v17  ;;  %v1619_v21 = vpack.c.bf16 %v481_v19, %v479_v16 }
  0x92   : > { %1620 = vmatprep.subr.bf16.mxu0 %v1619_v21 }
  0x93   : > { %v426_v23 = vpop.permute.xlu1 %425  ;;  %v424_v24 = vpop.permute.xlu0 %423  ;;  %1622 = vmatpush1.bf16.msra.mxu0 %v1621_v22  ;;  %v485_v26 = vld [vmem:[#allocation2 + $0x38] sm:$0xff] }
  0x94   : > { %432 = vst.msk [vmem:[#allocation2 + $0x58] sm:$0xff] %vm361_vm0, %v426_v23  ;;  %v428_v27 = vsel %vm427_vm5, %v424_v24, %v426_v23  ;;  %v1623_v28 = vpack.c.bf16 %v485_v26, %v483_v25 }
  0x95   : > { %v1629_v39 = vpack.c.bf16 %v428_v27, %v414_v20  ;;  %v1037_v27 = vld [vmem:[%s2249_s6 + $0x8] sm:$0xff] }
  0x96   : > { %1624 = vmatprep.subr.bf16.mxu0 %v1623_v28  ;;  %1609 = vmatprep.mubr.msk.f32.mxu1 %vm1114_vm11, %v1037_v27  ;;  %v1096_v28 = vld [vmem:[%s2250_s7] sm:$0xff] }
  0x97   : > { %v440_v30 = vpop.permute.xlu1 %439  ;;  %v438_v31 = vpop.permute.xlu0 %437  ;;  %1626 = vmatpush1.bf16.msra.mxu0 %v1625_v29  ;;  %v487_v35 = vld [vmem:[#allocation2 + $0x48] sm:$0xff] }
  0x98   : > { %446 = vst.msk [vmem:[#allocation2 + $0x68] sm:$0xff] %vm361_vm0, %v440_v30  ;;  %v442_v32 = vsel %vm441_vm6, %v438_v31, %v440_v30  ;;  %v1097_v29 = vld [vmem:[%s2250_s7 + $0x8] sm:$0xff]  ;;  %vm1429_vm6 = vcmask 64512  }
  0x9b   : > { %v454_v33 = vpop.permute.xlu1 %453  ;;  %v452_v34 = vpop.permute.xlu0 %451  ;;  %v489_v36 = vld [vmem:[#allocation2 + $0x58] sm:$0xff] }
  0x9c   : > { %460 = vst.msk [vmem:[#allocation2 + $0x78] sm:$0xff] %vm361_vm0, %v454_v33  ;;  %v456_v37 = vsel %vm455_vm7, %v452_v34, %v454_v33  ;;  %v1627_v38 = vpack.c.bf16 %v489_v36, %v487_v35  ;;  %v1214_v33 = vld [vmem:[%s2252_s9] sm:$0x7] }
  0x9d   : > { %v1633_v46 = vpack.c.bf16 %v456_v37, %v442_v32  ;;  %v1098_v32 = vld [vmem:[%s2250_s7 + $0x10] sm:$0xff] }
  0x9e   : > { %1628 = vmatprep.subr.bf16.mxu0 %v1627_v38 }
  0x9f   : > { %1630 = vmatpush1.bf16.msra.mxu0 %v1629_v39  ;;  %v468_v40 = vpop.permute.xlu1 %467  ;;  %v466_v41 = vpop.permute.xlu0 %465  ;;  %v491_v43 = vld [vmem:[#allocation2 + $0x68] sm:$0xff] }
  0xa0   : > { %474 = vst.msk [vmem:[#allocation2 + $0x88] sm:$0xff] %vm361_vm0, %v468_v40  ;;  %v470_v42 = vsel %vm469_vm8, %v466_v41, %v468_v40 }
  0xa3   : > { %v493_v44 = vld [vmem:[#allocation2 + $0x78] sm:$0xff] }
  0xa4   : > { %v1631_v45 = vpack.c.bf16 %v493_v44, %v491_v43 }
  0xa6   : > { %1632 = vmatprep.subr.bf16.mxu0 %v1631_v45 }
  0xa7   : > { %1634 = vmatpush1.bf16.msra.mxu0 %v1633_v46  ;;  %v495_v47 = vld [vmem:[#allocation2 + $0x88] sm:$0xff] }
  0xa8   : > { %540 = vmatprep.subr.mxu0 %v495_v47 }
  0xab   : > { %541 = vmatpush1.msra.mxu0 %v470_v42 }
  0xac   : > { %1606 = vmatmul.mubr.msk.f32.vlgmr.msra.gmra.mrb[0].mxu0 %vm514_vm9, %v475_v48 }
  0xad   : > { %594 = vmatprep.mubr.f32.mxu0 %v1789_v2 }
  0xb0   : > { %1607 = vmatmul.mubr.msk.f32.gmra.mrb[2].mxu0 %vm514_vm9, %v476_v49  ;;  %v502_v54 = vpop.permute.xlu0 %501  ;;  %v507_v63 = vpop.permute.xlu1 %506 }
  0xb1   : > { %600 = vmatprep.mubr.f32.mxu0 %v1789_v2 }
  0xb4   : > { %1608 = vmatmul.mubr.msk.f32.gmra.mrb[4].mxu0 %vm514_vm9, %v477_v50  ;;  %v512_v9 = vpop.permute.xlu1 %511  ;;  %v1747_v26 = vpop.permute.xlu0 %1746 }
  0xb5   : > { %1288 = vmatprep.mubr.f32.mxu0 %v1789_v2  ;;  %v1748_v38 = vunpack.i.l.bf16 %v1747_v26 }
  0xb8   : > { %v2022_v25 = vpop.permute.xlu1 %677  ;;  %v1752_v31 = vpop.permute.xlu0 %1751 }
  0xb9   : > { %v1753_v39 = vunpack.i.l.bf16 %v1752_v31 }
  0xbc   : > { %v2037_v30 = vpop.permute.xlu1 %732  ;;  %v1757_v35 = vpop.permute.xlu0 %1756 }
  0xbd   : > { %v1758_v44 = vunpack.i.l.bf16 %v1757_v35 }
  0xc0   : > { %v2045_v34 = vpop.permute.xlu1 %787  ;;  %v1762_v37 = vpop.permute.xlu0 %1761 }
  0xc1   : > { %v1763_v45 = vunpack.i.l.bf16 %v1762_v37 }
  0xc4   : > { %v2047_v36 = vpop.permute.xlu1 %842 }
 0x17f   : > { %v590_v57 = vpop.f32.mrb[0].mxu0 }
 0x180   : > { %v591_v58 = vadd.f32 %v590_v57, %v502_v54  ;;  %v592_v60 = vpop.f32.mrb[1].mxu0 }
 0x181   : > { %v593_v61 = vadd.f32 %v592_v60, %v502_v54 }
 0x182   : > { %v607_v0 = vmax.f32 %v591_v58, 0.0 }
 0x183   : > { %v608_v1 = vmax.f32 %v593_v61, 0.0  ;;  %v596_v3 = vpop.f32.mrb[2].mxu0 }
 0x184   : > { %v1947_v4 = vmul.f32 %v628_v59, %v607_v0  ;;  %v597_v5 = vadd.f32 %v596_v3, %v507_v63  ;;  %v598_v6 = vpop.f32.mrb[3].mxu0  ;;  %v1754_v0 = vunpack.i.h.bf16 %v1752_v31 }
 0x185   : > { %v636_v7 = vmul.f32 %v632_v62, %v608_v1  ;;  %v599_v8 = vadd.f32 %v598_v6, %v507_v63  ;;  %v1749_v63 = vunpack.i.h.bf16 %v1747_v26 }
 0x186   : > { %v609_v10 = vmax.f32 %v597_v5, 0.0  ;;  %722 = vrot.lane.b32.xlu1 %v1947_v4, %s1793_s25  ;;  %667 = vrot.lane.b32.xlu0 %v1947_v4, %s1792_s15 }
 0x187   : > { %642 = vst.msk [vmem:[#allocation4 + $0x10] sm:$0xff] %vm361_vm0, %v636_v7  ;;  %v610_v11 = vmax.f32 %v599_v8, 0.0  ;;  %v602_v12 = vpop.f32.mrb[4].mxu0  ;;  %v1759_v7 = vunpack.i.h.bf16 %v1757_v35  ;;  %v1764_v8 = vunpack.i.h.bf16 %v1762_v37 }
 0x188   : > { %v1954_v13 = vmul.f32 %v628_v59, %v609_v10  ;;  %v603_v14 = vadd.f32 %v602_v12, %v512_v9  ;;  %v604_v15 = vpop.f32.mrb[5].mxu0 }
 0x189   : > { %v638_v16 = vmul.f32 %v632_v62, %v610_v11  ;;  %v605_v17 = vadd.f32 %v604_v15, %v512_v9 }
 0x18a   : > { %832 = vrot.lane.b32.xlu1 %v1947_v4, %s1795_s27  ;;  %777 = vrot.lane.b32.xlu0 %v1947_v4, %s1794_s26  ;;  %v611_v18 = vmax.f32 %v603_v14, 0.0 }
 0x18b   : > { %644 = vst.msk [vmem:[#allocation4 + $0x30] sm:$0xff] %vm361_vm0, %v638_v16  ;;  %v612_v19 = vmax.f32 %v605_v17, 0.0 }
 0x18c   : > { %v1961_v20 = vmul.f32 %v628_v59, %v611_v18 }
 0x18d   : > { %v640_v21 = vmul.f32 %v632_v62, %v612_v19 }
 0x18e   : > { %v649_v22 = vld [vmem:[#allocation4 + $0x10] sm:$0xff]  ;;  %891 = vrot.lane.b32.xlu0 %v1947_v4, %s1783_s20 }
 0x18f   : > { %646 = vst.msk [vmem:[#allocation4 + $0x50] sm:$0xff] %vm361_vm0, %v640_v21  ;;  %669 = vrot.lane.b32.xlu1 %v649_v22, %s1792_s15  ;;  %874 = vst.msk [vmem:[#allocation3 + $0xc8] sm:$0xff] %vm361_vm0, %v649_v22 }
 0x192   : > { %724 = vrot.lane.b32.xlu0 %v649_v22, %s1793_s25  ;;  %v652_v23 = vld [vmem:[#allocation4 + $0x30] sm:$0xff] }
 0x193   : > { %779 = vrot.lane.b32.xlu1 %v649_v22, %s1794_s26  ;;  %876 = vst.msk [vmem:[#allocation3 + $0xd8] sm:$0xff] %vm361_vm0, %v652_v23 }
 0x196   : > { %834 = vrot.lane.b32.xlu0 %v649_v22, %s1795_s27  ;;  %v655_v24 = vld [vmem:[#allocation4 + $0x50] sm:$0xff] }
 0x197   : > { %893 = vrot.lane.b32.xlu1 %v649_v22, %s1783_s20  ;;  %878 = vst.msk [vmem:[#allocation3 + $0xe8] sm:$0xff] %vm361_vm0, %v655_v24 }
 0x19a   : > { %673 = vrot.lane.b32.xlu0 %v1954_v13, %s1792_s15 }
 0x19b   : > { %728 = vrot.lane.b32.xlu1 %v1954_v13, %s1793_s25 }
 0x19e   : > { %783 = vrot.lane.b32.xlu0 %v1954_v13, %s1794_s26 }
 0x19f   : > { %838 = vrot.lane.b32.xlu1 %v1954_v13, %s1795_s27 }
 0x1a2   : > { %895 = vrot.lane.b32.xlu0 %v1954_v13, %s1783_s20 }
 0x1a3   : > { %675 = vrot.lane.b32.xlu1 %v652_v23, %s1792_s15 }
 0x1a6   : > { %730 = vrot.lane.b32.xlu0 %v652_v23, %s1793_s25 }
 0x1a7   : > { %785 = vrot.lane.b32.xlu1 %v652_v23, %s1794_s26 }
 0x1aa   : > { %840 = vrot.lane.b32.xlu0 %v652_v23, %s1795_s27 }
 0x1ab   : > { %897 = vrot.lane.b32.xlu1 %v652_v23, %s1783_s20 }
 0x1ae   : > { %681 = vrot.lane.b32.xlu0 %v655_v24, %s1792_s15 }
 0x1af   : > { %679 = vrot.lane.b32.xlu1 %v1961_v20, %s1792_s15 }
 0x1b2   : > { %736 = vrot.lane.b32.xlu0 %v655_v24, %s1793_s25 }
 0x1b3   : > { %734 = vrot.lane.b32.xlu1 %v1961_v20, %s1793_s25 }
 0x1b6   : > { %899 = vrot.lane.b32.xlu0 %v1961_v20, %s1783_s20 }
 0x1b7   : > { %789 = vrot.lane.b32.xlu1 %v1961_v20, %s1794_s26 }
 0x1ba   : > { %791 = vrot.lane.b32.xlu0 %v655_v24, %s1794_s26 }
 0x1bb   : > { %844 = vrot.lane.b32.xlu1 %v1961_v20, %s1795_s27 }
 0x1be   : > { %846 = vrot.lane.b32.xlu0 %v655_v24, %s1795_s27 }
 0x1bf   : > { %932 = vrot.lane.b32.xlu1 %v649_v22, %s1796_s30 }
 0x1c2   : > { %930 = vrot.lane.b32.xlu0 %v1947_v4, %s1796_s30 }
 0x1c3   : > { %936 = vrot.lane.b32.xlu1 %v652_v23, %s1796_s30 }
 0x1c6   : > { %934 = vrot.lane.b32.xlu0 %v1954_v13, %s1796_s30 }
 0x1c7   : > { %972 = vrot.lane.b32.xlu1 %v649_v22, %s1784_s21 }
 0x1ca   : > { %938 = vrot.lane.b32.xlu0 %v1961_v20, %s1796_s30 }
 0x1cb   : > { %976 = vrot.lane.b32.xlu1 %v652_v23, %s1784_s21 }
 0x1ce   : > { %970 = vrot.lane.b32.xlu0 %v1947_v4, %s1784_s21 }
 0x1cf   : > { %901 = vrot.lane.b32.xlu1 %v655_v24, %s1783_s20 }
 0x1d2   : > { %974 = vrot.lane.b32.xlu0 %v1954_v13, %s1784_s21 }
 0x1d3   : > { %1011 = vrot.lane.b32.xlu1 %v649_v22, %s1785_s22 }
 0x1d6   : > { %978 = vrot.lane.b32.xlu0 %v1961_v20, %s1784_s21 }
 0x1d7   : > { %940 = vrot.lane.b32.xlu1 %v655_v24, %s1796_s30 }
 0x1da   : > { %1009 = vrot.lane.b32.xlu0 %v1947_v4, %s1785_s22 }
 0x1db   : > { %980 = vrot.lane.b32.xlu1 %v655_v24, %s1784_s21 }
 0x1de   : > { %1013 = vrot.lane.b32.xlu0 %v1954_v13, %s1785_s22 }
 0x1df   : > { %1015 = vrot.lane.b32.xlu1 %v652_v23, %s1785_s22 }
 0x1e2   : > { %1017 = vrot.lane.b32.xlu0 %v1961_v20, %s1785_s22 }
 0x1e3   : > { %1019 = vrot.lane.b32.xlu1 %v655_v24, %s1785_s22  ;;  %s1605_s22 = sshll.u32 %s2255_s14, 1 }
 0x1e4   : > { %s357_s26 = scalar_lea.vmem %s2253_s10, %s1605_s22 }
 0x1e6   : > { %1101 = vperm.xlu0 %1743, %v1096_v28  }
 0x1e7   : > { %1106 = vperm.xlu1 %1744, %v1097_v29  }
 0x1ea   : > { %1111 = vperm.xlu0 %1743, %v1098_v32  }
 0x1eb   : > { %1217 = vperm.xlu1 %1744, %v1214_v33  }
 0x1f8   : > { %v723_v40 = vpop.permute.xlu1 %722  ;;  %v668_v41 = vpop.permute.xlu0 %667 }
 0x1f9   : > { %v2050_v42 = vsel %vm738_vm12, %v1753_v39, %v723_v40  ;;  %v2053_v43 = vsel %vm683_vm13, %v1748_v38, %v668_v41 }
 0x1fc   : > { %v833_v46 = vpop.permute.xlu1 %832  ;;  %v778_v47 = vpop.permute.xlu0 %777 }
 0x1fd   : > { %v2056_v48 = vsel %vm848_vm14, %v1763_v45, %v833_v46  ;;  %v2059_v49 = vsel %vm793_vm15, %v1758_v44, %v778_v47 }
 0x200   : > { %v892_v50 = vpop.permute.xlu0 %891 }
 0x201   : > { %v670_v53 = vpop.permute.xlu1 %669 }
 0x202   : > { %v685_v54 = vsel %vm683_vm13, %v668_v41, %v670_v53 }
 0x203   : > { %697 = vst.msk [vmem:[#allocation3 + $0x8] sm:$0xff] %vm361_vm0, %v685_v54 }
 0x204   : > { %v725_v55 = vpop.permute.xlu0 %724 }
 0x205   : > { %v780_v56 = vpop.permute.xlu1 %779  ;;  %v740_v57 = vsel %vm738_vm12, %v723_v40, %v725_v55 }
 0x206   : > { %v795_v58 = vsel %vm793_vm15, %v778_v47, %v780_v56  ;;  %752 = vst.msk [vmem:[#allocation3 + $0x38] sm:$0xff] %vm361_vm0, %v740_v57 }
 0x207   : > { %807 = vst.msk [vmem:[#allocation3 + $0x68] sm:$0xff] %vm361_vm0, %v795_v58 }
 0x208   : > { %v835_v59 = vpop.permute.xlu0 %834 }
 0x209   : > { %v894_v60 = vpop.permute.xlu1 %893  ;;  %v850_v61 = vsel %vm848_vm14, %v833_v46, %v835_v59 }
 0x20a   : > { %v2069_v62 = vsel %vm371_vm2, %v892_v50, %v894_v60  ;;  %913 = vst.msk [vmem:[#allocation3 + $0xf8] sm:$0xff] %vm361_vm0, %v894_v60  ;;  %862 = vst.msk [vmem:[#allocation3 + $0x98] sm:$0xff] %vm361_vm0, %v850_v61  ;;  %v1043_v27 = vld [vmem:[#allocation3 + $0x8] sm:$0xff] }
 0x20c   : > { %v674_v1 = vpop.permute.xlu0 %673 }
 0x20d   : > { %v729_v3 = vpop.permute.xlu1 %728  ;;  %v686_v5 = vsel %vm683_vm13, %v1749_v63, %v674_v1  ;;  %v1049_v46 = vld [vmem:[#allocation3 + $0x38] sm:$0xff] }
 0x20e   : > { %v2075_v6 = vsel %vm738_vm12, %v1754_v0, %v729_v3  ;;  %v1637_v32 = vpack.c.bf16 %v686_v5, %v2053_v43  ;;  %v1055_v61 = vld [vmem:[#allocation3 + $0x68] sm:$0xff] }
 0x210   : > { %v784_v9 = vpop.permute.xlu0 %783 }
 0x211   : > { %v839_v10 = vpop.permute.xlu1 %838  ;;  %v2078_v11 = vsel %vm793_vm15, %v1759_v7, %v784_v9  ;;  %v1061_v7 = vld [vmem:[#allocation3 + $0x98] sm:$0xff] }
 0x212   : > { %v2081_v12 = vsel %vm848_vm14, %v1764_v8, %v839_v10 }
 0x214   : > { %v896_v14 = vpop.permute.xlu0 %895 }
 0x215   : > { %v676_v15 = vpop.permute.xlu1 %675 }
 0x216   : > { %v687_v16 = vsel %vm683_vm13, %v674_v1, %v676_v15  ;;  %v1649_v1 = vpack.c.bf16 %v2078_v11, %v2059_v49  ;;  %v1069_v11 = vld [vmem:[#allocation3 + $0xd8] sm:$0xff] }
 0x217   : > { %699 = vst.msk [vmem:[#allocation3 + $0x18] sm:$0xff] %vm361_vm0, %v687_v16 }
 0x218   : > { %v731_v17 = vpop.permute.xlu0 %730 }
 0x219   : > { %v786_v18 = vpop.permute.xlu1 %785  ;;  %v742_v19 = vsel %vm738_vm12, %v729_v3, %v731_v17 }
 0x21a   : > { %v797_v21 = vsel %vm793_vm15, %v784_v9, %v786_v18  ;;  %754 = vst.msk [vmem:[#allocation3 + $0x48] sm:$0xff] %vm361_vm0, %v742_v19 }
 0x21b   : > { %809 = vst.msk [vmem:[#allocation3 + $0x78] sm:$0xff] %vm361_vm0, %v797_v21  ;;  %v1067_v21 = vld [vmem:[#allocation3 + $0xc8] sm:$0xff] }
 0x21c   : > { %v841_v22 = vpop.permute.xlu0 %840 }
 0x21d   : > { %v898_v23 = vpop.permute.xlu1 %897  ;;  %v852_v24 = vsel %vm848_vm14, %v839_v10, %v841_v22 }
 0x21e   : > { %v2091_v26 = vsel %vm371_vm2, %v896_v14, %v898_v23  ;;  %915 = vst.msk [vmem:[#allocation3 + $0x108] sm:$0xff] %vm361_vm0, %v898_v23  ;;  %864 = vst.msk [vmem:[#allocation3 + $0xa8] sm:$0xff] %vm361_vm0, %v852_v24  ;;  %v1045_v28 = vld [vmem:[#allocation3 + $0x18] sm:$0xff]  ;;  %v1659_v23 = vpack.c.bf16 %v1069_v11, %v1067_v21 }
 0x21f   : > { %v1635_v29 = vpack.c.bf16 %v1045_v28, %v1043_v27  ;;  %v1661_v27 = vpack.c.bf16 %v1954_v13, %v1947_v4  ;;  %v1071_v28 = vld [vmem:[#allocation3 + $0xe8] sm:$0xff] }
 0x220   : > { %v682_v31 = vpop.permute.xlu0 %681 }
 0x221   : > { %v680_v33 = vpop.permute.xlu1 %679  ;;  %1636 = vmatprep.subr.bf16.mxu1 %v1635_v29  ;;  %v1051_v56 = vld [vmem:[#allocation3 + $0x48] sm:$0xff] }
 0x222   : > { %v688_v35 = vsel %vm683_vm13, %v2022_v25, %v680_v33  ;;  %v689_v37 = vsel %vm683_vm13, %v680_v33, %v682_v31  ;;  %1638 = vmatpush1.bf16.msra.mxu1 %v1637_v32  ;;  %v1057_v58 = vld [vmem:[#allocation3 + $0x78] sm:$0xff] }
 0x223   : > { %701 = vst.msk [vmem:[#allocation3 + $0x28] sm:$0xff] %vm361_vm0, %v689_v37  ;;  %v1641_v53 = vpack.c.bf16 %v2050_v42, %v688_v35  ;;  %v1647_v0 = vpack.c.bf16 %v1057_v58, %v1055_v61  ;;  %v1665_v35 = vpack.c.bf16 %v2069_v62, %v1961_v20 }
 0x224   : > { %v737_v38 = vpop.permute.xlu0 %736 }
 0x225   : > { %v735_v39 = vpop.permute.xlu1 %734  ;;  %v1063_v16 = vld [vmem:[#allocation3 + $0xa8] sm:$0xff] }
 0x226   : > { %v743_v40 = vsel %vm738_vm12, %v2037_v30, %v735_v39  ;;  %v744_v41 = vsel %vm738_vm12, %v735_v39, %v737_v38  ;;  %v1075_v39 = vld [vmem:[#allocation3 + $0x108] sm:$0xff] }
 0x227   : > { %756 = vst.msk [vmem:[#allocation3 + $0x58] sm:$0xff] %vm361_vm0, %v744_v41  ;;  %v1645_v60 = vpack.c.bf16 %v743_v40, %v2075_v6 }
 0x228   : > { %v2104_v43 = vpop.permute.xlu0 %899 }
 0x229   : > { %v790_v44 = vpop.permute.xlu1 %789 }
 0x22a   : > { %v798_v25 = vsel %vm793_vm15, %v2045_v34, %v790_v44  ;;  %v1047_v45 = vld [vmem:[#allocation3 + $0x28] sm:$0xff] }
 0x22b   : > { %v1639_v47 = vpack.c.bf16 %v1049_v46, %v1047_v45  ;;  %v1653_v10 = vpack.c.bf16 %v2056_v48, %v798_v25  ;;  %v1073_v48 = vld [vmem:[#allocation3 + $0xf8] sm:$0xff] }
 0x22c   : > { %v792_v50 = vpop.permute.xlu0 %791  ;;  %v1663_v32 = vpack.c.bf16 %v1073_v48, %v1071_v28 }
 0x22d   : > { %v845_v54 = vpop.permute.xlu1 %844  ;;  %1640 = vmatprep.subr.bf16.mxu1 %v1639_v47  ;;  %v799_v30 = vsel %vm793_vm15, %v790_v44, %v792_v50 }
 0x22e   : > { %v853_v55 = vsel %vm848_vm14, %v2047_v36, %v845_v54  ;;  %811 = vst.msk [vmem:[#allocation3 + $0x88] sm:$0xff] %vm361_vm0, %v799_v30  ;;  %1642 = vmatpush1.bf16.msra.mxu1 %v1641_v53  ;;  %v1053_v57 = vld [vmem:[#allocation3 + $0x58] sm:$0xff] }
 0x22f   : > { %v1643_v34 = vpack.c.bf16 %v1053_v57, %v1051_v56  ;;  %v1657_v19 = vpack.c.bf16 %v853_v55, %v2081_v12 }
 0x230   : > { %v847_v59 = vpop.permute.xlu0 %846 }
 0x231   : > { %v933_v63 = vpop.permute.xlu1 %932  ;;  %1644 = vmatprep.subr.bf16.mxu1 %v1643_v34  ;;  %v854_v42 = vsel %vm848_vm14, %v845_v54, %v847_v59 }
 0x232   : > { %953 = vst.msk [vmem:[#allocation3 + $0x128] sm:$0xff] %vm361_vm0, %v933_v63  ;;  %866 = vst.msk [vmem:[#allocation3 + $0xb8] sm:$0xff] %vm361_vm0, %v854_v42  ;;  %1646 = vmatpush1.bf16.msra.mxu1 %v1645_v60 }
 0x233   : > { %1648 = vmatprep.subr.bf16.mxu1 %v1647_v0 }
 0x234   : > { %v931_v36 = vpop.permute.xlu0 %930 }
 0x235   : > { %v937_v3 = vpop.permute.xlu1 %936  ;;  %v2120_v5 = vsel %vm942_vm1, %v931_v36, %v933_v63  ;;  %v1059_v6 = vld [vmem:[#allocation3 + $0x88] sm:$0xff] }
 0x236   : > { %955 = vst.msk [vmem:[#allocation3 + $0x138] sm:$0xff] %vm361_vm0, %v937_v3  ;;  %1650 = vmatpush1.bf16.msra.mxu1 %v1649_v1  ;;  %v1651_v8 = vpack.c.bf16 %v1061_v7, %v1059_v6  ;;  %v1036_v7 = vld [vmem:[%s2249_s6] sm:$0xff] }
 0x238   : > { %1652 = vmatprep.subr.bf16.mxu1 %v1651_v8  ;;  %v935_v9 = vpop.permute.xlu0 %934  ;;  %v1039_v8 = vld [vmem:[%s2249_s6 + $0x18] sm:$0xff] }
 0x239   : > { %v973_v14 = vpop.permute.xlu1 %972  ;;  %v944_v15 = vsel %vm942_vm1, %v935_v9, %v937_v3  ;;  %v1065_v17 = vld [vmem:[#allocation3 + $0xb8] sm:$0xff]  ;;  %v1079_v45 = vld [vmem:[#allocation3 + $0x128] sm:$0xff]  ;;  %v1038_v9 = vld [vmem:[%s2249_s6 + $0x10] sm:$0xff] }
 0x23a   : > { %992 = vst.msk [vmem:[#allocation3 + $0x158] sm:$0xff] %vm361_vm0, %v973_v14  ;;  %1654 = vmatpush1.bf16.msra.mxu1 %v1653_v10  ;;  %v1655_v49 = vpack.c.bf16 %v1065_v17, %v1063_v16  ;;  %v1673_v53 = vpack.c.bf16 %v944_v15, %v2120_v5  ;;  %v1041_v10 = vld [vmem:[%s2249_s6 + $0x28] sm:$0xff] }
 0x23c   : > { %1656 = vmatprep.subr.bf16.mxu1 %v1655_v49  ;;  %v939_v18 = vpop.permute.xlu0 %938 }
 0x23d   : > { %v977_v22 = vpop.permute.xlu1 %976  ;;  %v1081_v41 = vld [vmem:[#allocation3 + $0x138] sm:$0xff] }
 0x23e   : > { %994 = vst.msk [vmem:[#allocation3 + $0x168] sm:$0xff] %vm361_vm0, %v977_v22  ;;  %1658 = vmatpush1.bf16.msra.mxu1 %v1657_v19  ;;  %v1671_v62 = vpack.c.bf16 %v1081_v41, %v1079_v45  ;;  %v1797_v41 = vmov 0.0|0.0   ;;  %v1331_v45 = vld [vmem:[%s2245_s2 + $0x20] sm:$0xff] }
 0x23f   : > { %1660 = vmatprep.subr.bf16.mxu1 %v1659_v23 }
 0x240   : > { %v971_v24 = vpop.permute.xlu0 %970 }
 0x241   : > { %v902_v29 = vpop.permute.xlu1 %901  ;;  %v982_v31 = vsel %vm399_vm3, %v971_v24, %v973_v14  ;;  %v1040_v14 = vld [vmem:[%s2249_s6 + $0x20] sm:$0xff] }
 0x242   : > { %v905_v12 = vsel %vm371_vm2, %v2104_v43, %v902_v29  ;;  %917 = vst.msk [vmem:[#allocation3 + $0x118] sm:$0xff] %vm361_vm0, %v902_v29  ;;  %1662 = vmatpush1.bf16.msra.mxu1 %v1661_v27  ;;  %vm1220_vm2 = vcmask 195584  }
 0x243   : > { %1664 = vmatprep.subr.bf16.mxu1 %v1663_v32  ;;  %v1669_v25 = vpack.c.bf16 %v905_v12, %v2091_v26  ;;  %v1085_v26 = vld [vmem:[#allocation3 + $0x158] sm:$0xff] }
 0x244   : > { %v975_v33 = vpop.permute.xlu0 %974 }
 0x245   : > { %v1012_v37 = vpop.permute.xlu1 %1011  ;;  %v983_v38 = vsel %vm399_vm3, %v975_v33, %v977_v22  ;;  %v1087_v60 = vld [vmem:[#allocation3 + $0x168] sm:$0xff] }
 0x246   : > { %1031 = vst.msk [vmem:[#allocation3 + $0x188] sm:$0xff] %vm361_vm0, %v1012_v37  ;;  %1666 = vmatpush1.bf16.msra.mxu1 %v1665_v35 }
 0x248   : > { %v979_v4 = vpop.permute.xlu0 %978 }
 0x249   : > { %v941_v13 = vpop.permute.xlu1 %940  ;;  %v1077_v40 = vld [vmem:[#allocation3 + $0x118] sm:$0xff] }
 0x24a   : > { %v945_v43 = vsel %vm942_vm1, %v939_v18, %v941_v13  ;;  %957 = vst.msk [vmem:[#allocation3 + $0x148] sm:$0xff] %vm361_vm0, %v941_v13  ;;  %v1667_v44 = vpack.c.bf16 %v1077_v40, %v1075_v39  ;;  %v1327_v13 = vld [vmem:[%s2245_s2] sm:$0xff]  ;;  %v1328_v39 = vld [vmem:[%s2245_s2 + $0x8] sm:$0xff] }
 0x24b   : > { %v1677_v58 = vpack.c.bf16 %v982_v31, %v945_v43  ;;  %v1692_v40 = vpack.c.bf16 %v1328_v39, %v1327_v13  ;;  %v1329_v43 = vld [vmem:[%s2245_s2 + $0x10] sm:$0xff] }
 0x24c   : > { %1668 = vmatprep.subr.bf16.mxu1 %v1667_v44  ;;  %v1010_v20 = vpop.permute.xlu0 %1009  ;;  %v1330_v44 = vld [vmem:[%s2245_s2 + $0x18] sm:$0xff] }
 0x24d   : > { %v981_v46 = vpop.permute.xlu1 %980  ;;  %1670 = vmatpush1.bf16.msra.mxu1 %v1669_v25  ;;  %v1021_v47 = vsel %vm413_vm4, %v1010_v20, %v1012_v37  ;;  %v1091_v36 = vld [vmem:[#allocation3 + $0x188] sm:$0xff]  ;;  %v1695_v25 = vpack.c.bf16 %v1330_v44, %v1329_v43  ;;  %v1332_v20 = vld [vmem:[%s2245_s2 + $0x28] sm:$0xff] }
 0x24e   : > { %v984_v50 = vsel %vm399_vm3, %v979_v4, %v981_v46  ;;  %996 = vst.msk [vmem:[#allocation3 + $0x178] sm:$0xff] %vm361_vm0, %v981_v46  ;;  %1672 = vmatprep.subr.bf16.mxu1 %v1671_v62  ;;  %v1213_v4 = vld [vmem:[%s2251_s8] sm:$0x7]  ;;  %v1698_v62 = vpack.c.bf16 %v1332_v20, %v1331_v45  ;;  %v1333_v46 = vld [vmem:[%s2245_s2 + $0x30] sm:$0xff]  ;;  %vm1353_vm3 = vcmask 1040384  }
 0x24f   : > { %v1681_v0 = vpack.c.bf16 %v984_v50, %v983_v38 }
 0x250   : > { %v1014_v54 = vpop.permute.xlu0 %1013 }
 0x251   : > { %v1016_v30 = vpop.permute.xlu1 %1015  ;;  %1674 = vmatpush1.bf16.msra.mxu1 %v1673_v53  ;;  %v1083_v55 = vld [vmem:[#allocation3 + $0x148] sm:$0xff]  ;;  %v1335_v53 = vld [vmem:[%s2245_s2 + $0x40] sm:$0xff] }
 0x252   : > { %1033 = vst.msk [vmem:[#allocation3 + $0x198] sm:$0xff] %vm361_vm0, %v1016_v30  ;;  %v1022_v56 = vsel %vm413_vm4, %v1014_v54, %v1016_v30  ;;  %v1675_v57 = vpack.c.bf16 %v1085_v26, %v1083_v55  ;;  %v1336_v54 = vld [vmem:[%s2245_s2 + $0x48] sm:$0xff]  ;;  %v1337_v55 = vld [vmem:[%s2245_s2 + $0x50] sm:$0xff]  ;;  %v1338_v26 = vld [vmem:[%s2245_s2 + $0x58] sm:$0xff] }
 0x253   : > { %v1685_v5 = vpack.c.bf16 %v1022_v56, %v1021_v47  ;;  %v1334_v47 = vld [vmem:[%s2245_s2 + $0x38] sm:$0xff]  ;;  %v1704_v30 = vpack.c.bf16 %v1336_v54, %v1335_v53  ;;  %v1707_v56 = vpack.c.bf16 %v1338_v26, %v1337_v55  ;;  %v1798_v53 = vmov 1966171168  }
 0x254   : > { %1676 = vmatprep.subr.bf16.mxu1 %v1675_v57  ;;  %v1018_v34 = vpop.permute.xlu0 %1017  ;;  %v1701_v50 = vpack.c.bf16 %v1334_v47, %v1333_v46  ;;  %v1339_v57 = vld [vmem:[%s2245_s2 + $0x60] sm:$0xff]  ;;  %v1526_v54 = vunpack.c.l.s4 %v1798_v53 }
 0x255   : > { %v1020_v59 = vpop.permute.xlu1 %1019  ;;  %1678 = vmatpush1.bf16.msra.mxu1 %v1677_v58  ;;  %v1089_v61 = vld [vmem:[#allocation3 + $0x178] sm:$0xff] }
 0x256   : > { %1035 = vst.msk [vmem:[#allocation3 + $0x1a8] sm:$0xff] %vm361_vm0, %v1020_v59  ;;  %v1023_v63 = vsel %vm413_vm4, %v1018_v34, %v1020_v59  ;;  %v1679_v42 = vpack.c.bf16 %v1089_v61, %v1087_v60  ;;  %v1340_v58 = vld [vmem:[%s2245_s2 + $0x68] sm:$0xff]  ;;  %v1341_v59 = vld [vmem:[%s2245_s2 + $0x70] sm:$0xff]  ;;  %v1342_v60 = vld [vmem:[%s2245_s2 + $0x78] sm:$0xff] }
 0x257   : > { %v1710_v34 = vpack.c.bf16 %v1340_v58, %v1339_v57  ;;  %v1713_v61 = vpack.c.bf16 %v1342_v60, %v1341_v59  ;;  %v1527_v57 = vunpack.c.0.s8 %v1526_v54 }
 0x258   : > { %1680 = vmatprep.subr.bf16.mxu1 %v1679_v42  ;;  %v1344_v42 = vld [vmem:[%s2245_s2 + $0x88] sm:$0xff] }
 0x259   : > { %1682 = vmatpush1.bf16.msra.mxu1 %v1681_v0  ;;  %v1093_v1 = vld [vmem:[#allocation3 + $0x198] sm:$0xff] }
 0x25a   : > { %v1683_v3 = vpack.c.bf16 %v1093_v1, %v1091_v36  ;;  %v1773_v36 = vld [vmem:[#allocation4] sm:$0xff]  ;;  %v1345_v1 = vld [vmem:[%s2245_s2 + $0x90] sm:$0x1] }
 0x25c   : > { %1684 = vmatprep.subr.bf16.mxu1 %v1683_v3  ;;  %v1428_v3 = vld [vmem:[%s2246_s3 + $0x8] sm:$0xff] }
 0x25d   : > { %1686 = vmatpush1.bf16.msra.mxu1 %v1685_v5  ;;  %v1095_v6 = vld [vmem:[#allocation3 + $0x1a8] sm:$0xff]  ;;  %v1427_v5 = vld [vmem:[%s2246_s3] sm:$0xff] }
 0x25e   : > { %1176 = vmatprep.subr.mxu1 %v1095_v6 }
 0x261   : > { %1177 = vmatpush1.msra.mxu1 %v1023_v63  ;;  %v1343_v63 = vld [vmem:[%s2245_s2 + $0x80] sm:$0xff] }
 0x262   : > { %1189 = vmatmul.mubr.f32.vlgmr.msra.gmra.mrb[0].mxu1 %v1036_v7  ;;  %v1716_v0 = vpack.c.bf16 %v1344_v42, %v1343_v63  ;;  %1433 = vmatprep.subr.mxu1 %v1428_v3  ;;  %v1530_v42 = vsub.s32 %v1527_v57, %v1940_v52 }
 0x263   : > { %1610 = vmatprep.mubr.msk.f32.mxu1 %vm1114_vm11, %v1039_v8  ;;  %1434 = vmatpush1.msra.mxu1 %v1427_v5 }
 0x265   : > { %v1102_v17 = vpop.permute.xlu0 %1101 }
 0x266   : > { %1195 = vmatmul.mubr.f32.gmra.mrb[2].mxu1 %v1038_v9  ;;  %v1107_v11 = vpop.permute.xlu1 %1106 }
 0x267   : > { %1611 = vmatprep.mubr.msk.f32.mxu1 %vm1114_vm11, %v1041_v10 }
 0x269   : > { %v1112_v31 = vpop.permute.xlu0 %1111 }
 0x26a   : > { %1201 = vmatmul.mubr.f32.gmra.mrb[4].mxu1 %v1040_v14  ;;  %v1218_v6 = vpop.permute.xlu1 %1217 }
 0x26b   : > { %1497 = vmatprep.mubr.f32.mxu1 %v1789_v2 }
 0x335   : > { %v1190_v15 = vpop.f32.mrb[0].mxu1 }
 0x336   : > { %v1192_v16 = vpop.f32.mrb[1].mxu1  ;;  %v1191_v49 = vadd.f32 %v1190_v15, %v1102_v17 }
 0x337   : > { %v1193_v18 = vadd.f32 %v1192_v16, %v1102_v17 }
 0x338   : > { %v1207_v48 = vmax.f32 %v1191_v49, 0.0 }
 0x339   : > { %v1196_v19 = vpop.f32.mrb[2].mxu1  ;;  %v1208_v27 = vmax.f32 %v1193_v18, 0.0 }
 0x33a   : > { %v1197_v21 = vadd.f32 %v1196_v19, %v1107_v11  ;;  %v1198_v22 = vpop.f32.mrb[3].mxu1 }
 0x33b   : > { %v1199_v23 = vadd.f32 %v1198_v22, %v1107_v11 }
 0x33c   : > { %v1209_v24 = vmax.f32 %v1197_v21, 0.0 }
 0x33d   : > { %v1210_v28 = vmax.f32 %v1199_v23, 0.0  ;;  %v1202_v29 = vpop.f32.mrb[4].mxu1 }
 0x33e   : > { %v1689_v32 = vpack.c.bf16 %v1209_v24, %v1207_v48  ;;  %v1204_v12 = vpop.f32.mrb[5].mxu1  ;;  %v1203_v35 = vadd.f32 %v1202_v29, %v1112_v31 }
 0x33f   : > { %v1687_v33 = vpack.c.bf16 %v1210_v28, %v1208_v27  ;;  %v1205_v2 = vadd.f32 %v1204_v12, %v1112_v31 }
 0x340   : > { %v1211_v38 = vmax.f32 %v1203_v35, 0.0 }
 0x341   : > { %v1212_v37 = vmax.f32 %v1205_v2, 0.0  ;;  %1688 = vmatprep.subr.bf16.mxu0 %v1687_v33 }
 0x342   : > { %1690 = vmatpush1.bf16.msra.mxu0 %v1689_v32 }
 0x343   : > { %1228 = vmatprep.subr.mxu0 %v1212_v37 }
 0x346   : > { %1229 = vmatpush1.msra.mxu0 %v1211_v38 }
 0x347   : > { %1612 = vmatmul.mubr.msk.f32.vlgmr.msra.gmra.mrb[6].mxu0 %vm1220_vm2, %v1213_v4  ;;  %1691 = vmatprep.subr.bf16.mxu0 %v1797_v41 }
 0x348   : > { %1693 = vmatpush1.bf16.msra.mxu0 %v1692_v40 }
 0x349   : > { %1694 = vmatprep.subr.bf16.mxu0 %v1797_v41 }
 0x34c   : > { %1696 = vmatpush1.bf16.msra.mxu0 %v1695_v25 }
 0x34d   : > { %1697 = vmatprep.subr.bf16.mxu0 %v1797_v41 }
 0x350   : > { %1699 = vmatpush1.bf16.msra.mxu0 %v1698_v62 }
 0x351   : > { %1700 = vmatprep.subr.bf16.mxu0 %v1797_v41 }
 0x354   : > { %1702 = vmatpush1.bf16.msra.mxu0 %v1701_v50 }
 0x355   : > { %1703 = vmatprep.subr.bf16.mxu0 %v1797_v41 }
 0x358   : > { %1705 = vmatpush1.bf16.msra.mxu0 %v1704_v30 }
 0x359   : > { %1706 = vmatprep.subr.bf16.mxu0 %v1797_v41 }
 0x35c   : > { %1708 = vmatpush1.bf16.msra.mxu0 %v1707_v56 }
 0x35d   : > { %1709 = vmatprep.subr.bf16.mxu0 %v1797_v41 }
 0x360   : > { %1711 = vmatpush1.bf16.msra.mxu0 %v1710_v34 }
 0x361   : > { %1712 = vmatprep.subr.bf16.mxu0 %v1797_v41 }
 0x364   : > { %1714 = vmatpush1.bf16.msra.mxu0 %v1713_v61 }
 0x365   : > { %1715 = vmatprep.subr.bf16.mxu0 %v1797_v41 }
 0x368   : > { %1717 = vmatpush1.bf16.msra.mxu0 %v1716_v0 }
 0x369   : > { %1393 = vmatprep.subr.mxu0 %v1773_v36 }
 0x36c   : > { %1613 = vmatpush1.msk.msra.mxu0 %vm1353_vm3, %v1345_v1 }
 0x41a   : > { %v1290_v7 = vpop.f32.mrb[6].mxu0 }
 0x41b   : > { %v1291_v8 = vadd.f32 %v1290_v7, %v1218_v6  ;;  %v1292_v9 = vpop.f32.mrb[7].mxu0 }
 0x41c   : > { %v1293_v10 = vadd.f32 %v1292_v9, %v1218_v6 }
 0x41d   : > { %v1297_v14 = vand.u32 2147483647, %v1291_v8  ;;  %v1295_v2 = vmax.f32 %v1291_v8, 0.0 }
 0x41e   : > { %v1298_v15 = vand.u32 2147483647, %v1293_v10  ;;  %v1296_v4 = vmax.f32 %v1293_v10, 0.0 }
 0x41f   : > { %v1299_v16 = vsub.f32 0.0, %v1297_v14 }
 0x420   : > { %v1300_v17 = vsub.f32 0.0, %v1298_v15 }
 0x421   : > { %v1301_v49 = vmul.f32 1.442695, %v1299_v16 }
 0x422   : > { %v1303_v11 = vmul.f32 1.442695, %v1300_v17 }
 0x423   : > { %1765 = vpow2.f32 %v1301_v49 }
 0x424   : > { %1767 = vpow2.f32 %v1303_v11 }
 0x42d   : > { %v1766_v18 = vpop.eup %1765 }
 0x42e   : > { %v1768_v19 = vpop.eup %1767  ;;  %v1305_v21 = vadd.f32 1.0, %v1766_v18  ;;  %v1308_v23 = vmul.f32 -0.5, %v1766_v18  ;;  %v1311_v27 = vand.u32 2147483647, %v1766_v18 }
 0x42f   : > { %v1314_v22 = vadd.f32 1.0, %v1768_v19  ;;  %v1317_v48 = vmul.f32 -0.5, %v1768_v19  ;;  %v1320_v29 = vand.u32 2147483647, %v1768_v19 }
 0x430   : > { %1769 = vlog2.f32 %v1305_v21  ;;  %v1309_v24 = vadd.f32 1.0, %v1308_v23  ;;  %vm1312_vm4 = vcmp.lt.f32.partialorder %v1311_v27, 0.0004427343 }
 0x431   : > { %1771 = vlog2.f32 %v1314_v22  ;;  %v1318_v28 = vadd.f32 1.0, %v1317_v48  ;;  %vm1321_vm5 = vcmp.lt.f32.partialorder %v1320_v29, 0.0004427343 }
 0x432   : > { %v1310_v33 = vmul.f32 %v1766_v18, %v1309_v24 }
 0x433   : > { %v1319_v37 = vmul.f32 %v1768_v19, %v1318_v28 }
 0x43a   : > { %v1770_v31 = vpop.eup %1769 }
 0x43b   : > { %v1772_v32 = vpop.eup %1771  ;;  %v1307_v12 = vmul.f32 0.6931472, %v1770_v31 }
 0x43c   : > { %v1316_v35 = vmul.f32 0.6931472, %v1772_v32 }
 0x43d   : > { %v1313_v38 = vsel %vm1312_vm4, %v1310_v33, %v1307_v12 }
 0x43e   : > { %v1323_v13 = vadd.f32 %v1313_v38, %v1295_v2  ;;  %v1322_v39 = vsel %vm1321_vm5, %v1319_v37, %v1316_v35 }
 0x43f   : > { %v1324_v40 = vadd.f32 %v1322_v39, %v1296_v4 }
 0x440   : > { %v1325_v41 = vsub.f32 0.0, %v1323_v13 }
 0x441   : > { %v1326_v43 = vsub.f32 0.0, %v1324_v40 }
 0x442   : > { %v1348_v25 = vrot.slane %v1325_v41, 2  ;;  %v1504_v62 = vrot.slane %v1325_v41, 1  ;;  %v1510_v46 = vmul.f32 0.9, %v1325_v41 }
 0x443   : > { %v1349_v44 = vrot.slane %v1326_v43, 2  ;;  %v1505_v47 = vrot.slane %v1326_v43, 1  ;;  %v1511_v50 = vmul.f32 0.9, %v1326_v43 }
 0x444   : > { %v1508_v30 = vadd.f32 %v1504_v62, %v1325_v41  ;;  %v1514_v55 = vrot.slane %v1510_v46, 2 }
 0x445   : > { %1614 = vmatprep.mubr.msk.f32.mxu0 %vm361_vm0, %v1349_v44  ;;  %v1509_v26 = vadd.f32 %v1505_v47, %v1326_v43  ;;  %v1515_v56 = vrot.slane %v1511_v50, 2  ;;  %vm1542_vm0 = vcmp.lt.s32.totalorder %v625_v51, 145 }
 0x446   : > { %1422 = vmatmul.mubr.f32.vlgmr.msra.gmra.mrb[8].mxu0 %v1348_v25  ;;  %v1518_v58 = vadd.f32 %v1514_v55, %v1508_v30 }
 0x447   : > { %v1519_v59 = vadd.f32 %v1515_v56, %v1509_v26 }
 0x519   : > { %v1423_v45 = vpop.f32.mrb[8].mxu0 }
 0x51a   : > { %v1425_v20 = vpop.f32.mrb[9].mxu0  ;;  %1615 = vmatmul.mubr.msk.f32.vlgmr.msra.gmra.mrb[6].mxu1 %vm1429_vm6, %v1423_v45 }
 0x5ed   : > { %v1499_v34 = vpop.f32.mrb[6].mxu1 }
 0x5ee   : > { %v1520_v60 = vsub.f32 %v1518_v58, %v1499_v34  ;;  %v1501_v61 = vpop.f32.mrb[7].mxu1 }
 0x5ef   : > { %v1521_v63 = vsub.f32 %v1519_v59, %v1501_v61 }
 0x5f1   : > { %v1524_v0 = vcombine.low %v1520_v60, %v1521_v63 }
 0x5f3   : > { %v1531_v36 = vrot.slane %v1524_v0, %v1530_v42 }
 0x5f5   : > { %v1538_v1 = vrot.slane %v1531_v36, %v1530_v42 }
 0x5f7   : > { %1544 = vst.msk [vmem:[%s357_s26] sm:$0x3] %vm1542_vm0, %v1538_v1 }
 0x5f8 PF: > { %s20_s13 = sadd.s32 1, %s1780_s13  }
 0x5f9   : > { %p17_p4 = scmp.ge.s32.totalorder %s20_s13, 4  }
 0x5fb   :  { %19 = sbr.rel (!%p17_p4) target bundleno = 1 (0x1), region = 90 }

</bundles_post_ra>
